<compile_context>
chip_gen: v6e
topology: v6e:2x2x1
jax: 0.10.0
libtpu: 0.0.40
codegen_flags: <defaults>
</compile_context>

<pallas_src>
import functools

import jax
import jax.numpy as jnp
from jax.experimental import pallas as pl
from jax.experimental.pallas import tpu as pltpu


# ------------------------------ Pallas kernel -------------------------------


def _fused_atrous_bn_kernel(x_ref, w_ref, g_ref, b_ref, o_ref, *, rate, eps):
    # x_ref: (1, Hp, Wp, Cin)   one zero-padded batch element (NHWC)
    # w_ref: (Cout, 9*Cin)      bf16, column order (kh, kw, cin)
    # g_ref: (1, Cout, 1)       BN gamma (f32)
    # b_ref: (1, Cout, 1)       BN beta  (f32)
    # o_ref: (N, Cout, H*W)     f32; whole output resident in VMEM across grid
    n = pl.program_id(0)
    num_n = pl.num_programs(0)
    _, Hp, Wp, Cin = x_ref.shape
    N, Cout, HW = o_ref.shape
    H = Hp - 2 * rate
    W = Wp - 2 * rate

    x = x_ref[0]                                              # (Hp, Wp, Cin)
    cols = []
    for kh in range(3):
        for kw in range(3):
            patch = x[kh * rate: kh * rate + H,
                      kw * rate: kw * rate + W, :]            # (H, W, Cin)
            cols.append(patch.reshape(H * W, Cin))
    lhs = jnp.concatenate(cols, axis=-1).astype(jnp.bfloat16)  # (HW, 9*Cin)

    # One MXU contraction over the 9*Cin axis of both operands
    # (same 'contract-on-minor-dims' pattern as flash-attn's bqd,bkd->bqk).
    acc = jnp.einsum("ok,nk->on", w_ref[...], lhs,
                     preferred_element_type=jnp.float32)      # (Cout, HW) f32

    # NOTE: conv bias intentionally omitted — cancelled exactly by BN mean.
    o_ref[n] = acc

    @pl.when(n == num_n - 1)
    def _():
        # Training-mode BatchNorm with biased variance (matches PyTorch fwd).
        y = o_ref[...]                                        # (N, Cout, HW)
        cnt = jnp.float32(N * HW)
        s = jnp.sum(y, axis=(0, 2), keepdims=True)            # single pass:
        ss = jnp.sum(y * y, axis=(0, 2), keepdims=True)       # sum & sum-sq
        mean = s / cnt
        var = jnp.maximum(ss / cnt - mean * mean, 0.0)
        inv = jax.lax.rsqrt(var + eps)                        # EUP
        o_ref[...] = (y - mean) * inv * g_ref[...] + b_ref[...]


# ------------------------------- JAX wrapper --------------------------------


def atrous_module_forward(x_nchw, params, rate, eps=1e-5):
    """Equivalent of Atrous_module.forward (training mode) for NCHW input."""
    w = params["w"]                                   # (Cout, Cin, 3, 3)
    gamma, beta = params["gamma"], params["beta"]
    N, Cin, H, W = x_nchw.shape
    Cout = w.shape[0]
    HW = H * W
    Hp, Wp = H + 2 * rate, W + 2 * rate

    # NHWC + zero pad (only wrapper-side layout op on activations; the kernel
    # output already comes back in NCHW element order).
    xp = jnp.pad(jnp.transpose(x_nchw, (0, 2, 3, 1)),
                 ((0, 0), (rate, rate), (rate, rate), (0, 0)))

    # (Cout, Cin, 3, 3) -> (Cout, 9*Cin) with column order (kh, kw, cin),
    # matching the kernel's im2col tap order; bf16 MXU operand.
    w2 = jnp.transpose(w, (0, 2, 3, 1)).reshape(Cout, 9 * Cin)
    w2 = w2.astype(jnp.bfloat16)
    g = gamma.astype(jnp.float32).reshape(1, Cout, 1)
    b = beta.astype(jnp.float32).reshape(1, Cout, 1)

    cost = pl.CostEstimate(
        flops=2 * N * HW * Cout * 9 * Cin + 10 * N * HW * Cout,
        transcendentals=Cout,
        bytes_accessed=(xp.size * 4 + w2.size * 2
                        + (g.size + b.size) * 4 + N * Cout * HW * 4))

    out = pl.pallas_call(
        functools.partial(_fused_atrous_bn_kernel, rate=rate, eps=eps),
        out_shape=jax.ShapeDtypeStruct((N, Cout, HW), jnp.float32),
        grid=(N,),
        in_specs=[
            pl.BlockSpec((1, Hp, Wp, Cin), lambda n: (n, 0, 0, 0)),
            pl.BlockSpec((Cout, 9 * Cin), lambda n: (0, 0)),
            pl.BlockSpec((1, Cout, 1), lambda n: (0, 0, 0)),
            pl.BlockSpec((1, Cout, 1), lambda n: (0, 0, 0)),
        ],
        # Whole output stays VMEM-resident across the serial batch axis so BN
        # stats are computed without an HBM round trip (accumulator pattern).
        out_specs=pl.BlockSpec((N, Cout, HW), lambda n: (0, 0, 0)),
        compiler_params=pltpu.CompilerParams(
            dimension_semantics=("arbitrary",)),
        cost_estimate=cost,
    )(xp, w2, g, b)

    # (N, Cout, H*W) is already NCHW element order — reshape is free.
    return out.reshape(N, Cout, H, W)


# ----------------------------- pure-JAX reference ---------------------------


def reference_forward(x_nchw, params, rate, eps=1e-5):
    y = jax.lax.conv_general_dilated(
        x_nchw, params["w"], window_strides=(1, 1),
        padding=[(rate, rate), (rate, rate)],
        rhs_dilation=(rate, rate),
        dimension_numbers=("NCHW", "OIHW", "NCHW"))
    y = y + params["b"][None, :, None, None]
    mean = jnp.mean(y, axis=(0, 2, 3), keepdims=True)
    var = jnp.mean((y - mean) ** 2, axis=(0, 2, 3), keepdims=True)
    yhat = (y - mean) * jax.lax.rsqrt(var + eps)
    return (yhat * params["gamma"][None, :, None, None]
            + params["beta"][None, :, None, None])


# ---------------------------------- main ------------------------------------


if __name__ == "__main__":
    # Shapes consistent with Atrous_module(inplanes=4, planes=8, rate=2)
    N, Cin, Cout, H, W, rate = 2, 4, 8, 16, 16, 2

    key = jax.random.PRNGKey(0)
    kx, kw, kb, kg, kbeta = jax.random.split(key, 5)

    x = jax.random.normal(kx, (N, Cin, H, W), jnp.float32)
    params = {
        "w": jax.random.normal(kw, (Cout, Cin, 3, 3), jnp.float32) * 0.1,
        "b": jax.random.normal(kb, (Cout,), jnp.float32) * 0.05,
        "gamma": 1.0 + 0.1 * jax.random.normal(kg, (Cout,), jnp.float32),
        "beta": 0.1 * jax.random.normal(kbeta, (Cout,), jnp.float32),
    }

    out = atrous_module_forward(x, params, rate)
    out = jax.block_until_ready(out)

    ref = reference_forward(x, params, rate)
    assert out.shape == (N, Cout, H, W), out.shape
    # Tolerance accounts for bf16 MXU operands (f32 accumulation) vs the pure
    # f32 reference; conv bias is dropped in the kernel (cancelled by BN).
    assert jnp.allclose(out, ref, atol=5e-2, rtol=5e-2), (
        float(jnp.max(jnp.abs(out - ref))))

    print("KERNEL_OK")
</pallas_src>

<mosaic_0001>
module attributes {stable_mosaic.version = 11 : i64} {
  func.func @_fused_atrous_bn_kernel(%arg0: i32, %arg1: memref<1x20x20x4xf32, #tpu.memory_space<vmem>>, %arg2: memref<8x36xbf16, #tpu.memory_space<vmem>>, %arg3: memref<1x8x1xf32, #tpu.memory_space<vmem>>, %arg4: memref<1x8x1xf32, #tpu.memory_space<vmem>>, %arg5: memref<2x8x256xf32, #tpu.memory_space<vmem>>) attributes {dimension_semantics = [#tpu.dimension_semantics<arbitrary>], iteration_bounds = array<i64: 2>, scalar_prefetch = 0 : i64, scratch_operands = 0 : i64, tpu.core_type = #tpu.core_type<tc>, window_params = [{transform_indices = @transform_0, window_bounds = array<i64: 1, 20, 20, 4>}, {pipeline_mode = #tpu.pipeline_mode<synchronous>, transform_indices = @transform_1, window_bounds = array<i64: 8, 36>}, {pipeline_mode = #tpu.pipeline_mode<synchronous>, transform_indices = @transform_2, window_bounds = array<i64: 1, 8, 1>}, {pipeline_mode = #tpu.pipeline_mode<synchronous>, transform_indices = @transform_3, window_bounds = array<i64: 1, 8, 1>}, {pipeline_mode = #tpu.pipeline_mode<synchronous>, transform_indices = @transform_4, window_bounds = array<i64: 2, 8, 256>}]} {
    %c0 = arith.constant 0 : index
    %c0_0 = arith.constant 0 : index
    %c0_1 = arith.constant 0 : index
    %c0_2 = arith.constant 0 : index
    %0 = vector.load %arg1[%c0, %c0_0, %c0_1, %c0_2] : memref<1x20x20x4xf32, #tpu.memory_space<vmem>>, vector<1x20x20x4xf32>
    %1 = vector.shape_cast %0 : vector<1x20x20x4xf32> to vector<20x20x4xf32>
    %2 = vector.extract_strided_slice %1 {offsets = [0, 0, 0], sizes = [16, 16, 4], strides = [1, 1, 1]} : vector<20x20x4xf32> to vector<16x16x4xf32>
    %3 = vector.shape_cast %2 : vector<16x16x4xf32> to vector<256x4xf32>
    %4 = vector.extract_strided_slice %1 {offsets = [0, 2, 0], sizes = [16, 16, 4], strides = [1, 1, 1]} : vector<20x20x4xf32> to vector<16x16x4xf32>
    %5 = vector.shape_cast %4 : vector<16x16x4xf32> to vector<256x4xf32>
    %6 = vector.extract_strided_slice %1 {offsets = [0, 4, 0], sizes = [16, 16, 4], strides = [1, 1, 1]} : vector<20x20x4xf32> to vector<16x16x4xf32>
    %7 = vector.shape_cast %6 : vector<16x16x4xf32> to vector<256x4xf32>
    %8 = vector.extract_strided_slice %1 {offsets = [2, 0, 0], sizes = [16, 16, 4], strides = [1, 1, 1]} : vector<20x20x4xf32> to vector<16x16x4xf32>
    %9 = vector.shape_cast %8 : vector<16x16x4xf32> to vector<256x4xf32>
    %10 = vector.extract_strided_slice %1 {offsets = [2, 2, 0], sizes = [16, 16, 4], strides = [1, 1, 1]} : vector<20x20x4xf32> to vector<16x16x4xf32>
    %11 = vector.shape_cast %10 : vector<16x16x4xf32> to vector<256x4xf32>
    %12 = vector.extract_strided_slice %1 {offsets = [2, 4, 0], sizes = [16, 16, 4], strides = [1, 1, 1]} : vector<20x20x4xf32> to vector<16x16x4xf32>
    %13 = vector.shape_cast %12 : vector<16x16x4xf32> to vector<256x4xf32>
    %14 = vector.extract_strided_slice %1 {offsets = [4, 0, 0], sizes = [16, 16, 4], strides = [1, 1, 1]} : vector<20x20x4xf32> to vector<16x16x4xf32>
    %15 = vector.shape_cast %14 : vector<16x16x4xf32> to vector<256x4xf32>
    %16 = vector.extract_strided_slice %1 {offsets = [4, 2, 0], sizes = [16, 16, 4], strides = [1, 1, 1]} : vector<20x20x4xf32> to vector<16x16x4xf32>
    %17 = vector.shape_cast %16 : vector<16x16x4xf32> to vector<256x4xf32>
    %18 = vector.extract_strided_slice %1 {offsets = [4, 4, 0], sizes = [16, 16, 4], strides = [1, 1, 1]} : vector<20x20x4xf32> to vector<16x16x4xf32>
    %19 = vector.shape_cast %18 : vector<16x16x4xf32> to vector<256x4xf32>
    %20 = tpu.concatenate %3, %5, %7, %9, %11, %13, %15, %17, %19 in 1 : vector<256x4xf32>, vector<256x4xf32>, vector<256x4xf32>, vector<256x4xf32>, vector<256x4xf32>, vector<256x4xf32>, vector<256x4xf32>, vector<256x4xf32>, vector<256x4xf32> -> vector<256x36xf32>
    %21 = arith.truncf %20 : vector<256x36xf32> to vector<256x36xbf16>
    %c0_3 = arith.constant 0 : index
    %c0_4 = arith.constant 0 : index
    %22 = vector.load %arg2[%c0_3, %c0_4] : memref<8x36xbf16, #tpu.memory_space<vmem>>, vector<8x36xbf16>
    "tpu.trace_start"() <{level = 10 : i32, message = "ok,nk->on"}> : () -> ()
    %cst = arith.constant dense<0.000000e+00> : vector<8x256xf32>
    %23 = tpu.matmul %22, %21, %cst {dimension_numbers = #tpu.dot_dimension_numbers<[1], [1], [0], [0], [0, 0, 1, 0], [], []>} : vector<8x36xbf16>, vector<256x36xbf16>, vector<8x256xf32> -> vector<8x256xf32>
    "tpu.trace_stop"() : () -> ()
    %24 = arith.index_cast %arg0 : i32 to index
    %c0_5 = arith.constant 0 : index
    %c0_6 = arith.constant 0 : index
    %25 = vector.load %arg5[%24, %c0_5, %c0_6] : memref<2x8x256xf32, #tpu.memory_space<vmem>>, vector<1x8x256xf32>
    %26 = vector.shape_cast %25 : vector<1x8x256xf32> to vector<8x256xf32>
    %27 = vector.shape_cast %23 : vector<8x256xf32> to vector<1x8x256xf32>
    tpu.vector_store %arg5[%24, %c0_5, %c0_6], %27 {strides = array<i32>} : memref<2x8x256xf32, #tpu.memory_space<vmem>>, vector<1x8x256xf32>,
    %c1_i32 = arith.constant 1 : i32
    %28 = arith.cmpi eq, %arg0, %c1_i32 : i32
    %29 = arith.extui %28 : i1 to i32
    %c0_i32 = arith.constant 0 : i32
    %30 = arith.cmpi ne, %29, %c0_i32 : i32
    scf.if %30 {
      %c0_7 = arith.constant 0 : index
      %c0_8 = arith.constant 0 : index
      %c0_9 = arith.constant 0 : index
      %31 = vector.load %arg5[%c0_7, %c0_8, %c0_9] : memref<2x8x256xf32, #tpu.memory_space<vmem>>, vector<2x8x256xf32>
      %cst_10 = arith.constant dense<0.000000e+00> : vector<8xf32>
      %32 = vector.multi_reduction <add>, %31, %cst_10 [0, 2] : vector<2x8x256xf32> to vector<8xf32>
      %33 = vector.shape_cast %32 : vector<8xf32> to vector<1x8x1xf32>
      %34 = arith.mulf %31, %31 : vector<2x8x256xf32>
      %cst_11 = arith.constant dense<0.000000e+00> : vector<8xf32>
      %35 = vector.multi_reduction <add>, %34, %cst_11 [0, 2] : vector<2x8x256xf32> to vector<8xf32>
      %36 = vector.shape_cast %35 : vector<8xf32> to vector<1x8x1xf32>
      %cst_12 = arith.constant 5.120000e+02 : f32
      %37 = vector.broadcast %cst_12 : f32 to vector<1x8x1xf32>
      %38 = arith.divf %33, %37 : vector<1x8x1xf32>
      %cst_13 = arith.constant 5.120000e+02 : f32
      %39 = vector.broadcast %cst_13 : f32 to vector<1x8x1xf32>
      %40 = arith.divf %36, %39 : vector<1x8x1xf32>
      %41 = arith.mulf %38, %38 : vector<1x8x1xf32>
      %42 = arith.subf %40, %41 : vector<1x8x1xf32>
      %cst_14 = arith.constant 0.000000e+00 : f32
      %43 = vector.broadcast %cst_14 : f32 to vector<1x8x1xf32>
      %44 = arith.maximumf %42, %43 : vector<1x8x1xf32>
      %cst_15 = arith.constant 9.99999974E-6 : f32
      %45 = vector.broadcast %cst_15 : f32 to vector<1x8x1xf32>
      %46 = arith.addf %44, %45 : vector<1x8x1xf32>
      %47 = math.rsqrt %46 : vector<1x8x1xf32>
      %48 = vector.broadcast %38 : vector<1x8x1xf32> to vector<2x8x256xf32>
      %49 = arith.subf %31, %48 : vector<2x8x256xf32>
      %50 = vector.broadcast %47 : vector<1x8x1xf32> to vector<2x8x256xf32>
      %51 = arith.mulf %49, %50 : vector<2x8x256xf32>
      %c0_16 = arith.constant 0 : index
      %c0_17 = arith.constant 0 : index
      %c0_18 = arith.constant 0 : index
      %52 = vector.load %arg3[%c0_16, %c0_17, %c0_18] : memref<1x8x1xf32, #tpu.memory_space<vmem>>, vector<1x8x1xf32>
      %53 = vector.broadcast %52 : vector<1x8x1xf32> to vector<2x8x256xf32>
      %54 = arith.mulf %51, %53 : vector<2x8x256xf32>
      %c0_19 = arith.constant 0 : index
      %c0_20 = arith.constant 0 : index
      %c0_21 = arith.constant 0 : index
      %55 = vector.load %arg4[%c0_19, %c0_20, %c0_21] : memref<1x8x1xf32, #tpu.memory_space<vmem>>, vector<1x8x1xf32>
      %56 = vector.broadcast %55 : vector<1x8x1xf32> to vector<2x8x256xf32>
      %57 = arith.addf %54, %56 : vector<2x8x256xf32>
      %c0_22 = arith.constant 0 : index
      %c0_23 = arith.constant 0 : index
      %c0_24 = arith.constant 0 : index
      %58 = vector.load %arg5[%c0_22, %c0_23, %c0_24] : memref<2x8x256xf32, #tpu.memory_space<vmem>>, vector<2x8x256xf32>
      tpu.vector_store %arg5[%c0_22, %c0_23, %c0_24], %57 {strides = array<i32>} : memref<2x8x256xf32, #tpu.memory_space<vmem>>, vector<2x8x256xf32>,
    } else {
    }
    return
  }
  func.func @transform_0(%arg0: i32) -> (i32, i32, i32, i32) {
    %c0_i32 = arith.constant 0 : i32
    %c0_i32_0 = arith.constant 0 : i32
    %c0_i32_1 = arith.constant 0 : i32
    %c0_i32_2 = arith.constant 0 : i32
    return %arg0, %c0_i32, %c0_i32_0, %c0_i32_1 : i32, i32, i32, i32
  }
  func.func @transform_1(%arg0: i32) -> (i32, i32) {
    %c0_i32 = arith.constant 0 : i32
    %c0_i32_0 = arith.constant 0 : i32
    %c0_i32_1 = arith.constant 0 : i32
    return %c0_i32, %c0_i32_0 : i32, i32
  }
  func.func @transform_2(%arg0: i32) -> (i32, i32, i32) {
    %c0_i32 = arith.constant 0 : i32
    %c0_i32_0 = arith.constant 0 : i32
    %c0_i32_1 = arith.constant 0 : i32
    %c0_i32_2 = arith.constant 0 : i32
    return %c0_i32, %c0_i32_0, %c0_i32_1 : i32, i32, i32
  }
  func.func @transform_3(%arg0: i32) -> (i32, i32, i32) {
    %c0_i32 = arith.constant 0 : i32
    %c0_i32_0 = arith.constant 0 : i32
    %c0_i32_1 = arith.constant 0 : i32
    %c0_i32_2 = arith.constant 0 : i32
    return %c0_i32, %c0_i32_0, %c0_i32_1 : i32, i32, i32
  }
  func.func @transform_4(%arg0: i32) -> (i32, i32, i32) {
    %c0_i32 = arith.constant 0 : i32
    %c0_i32_0 = arith.constant 0 : i32
    %c0_i32_1 = arith.constant 0 : i32
    %c0_i32_2 = arith.constant 0 : i32
    return %c0_i32, %c0_i32_0, %c0_i32_1 : i32, i32, i32
  }
}

</mosaic_0001>

<bundles_post_ra>
// kernel: tpu_custom_call.1
= control target key start
LH: loop header
LB: loop body
LE: loop exit
PB: predicated region body
PF: predicated region fallthrough
CT: control target
= control target key end

     0   :  { %9 = vsyncpa [#allocation3], 0  ;;  %s2564_s15 = smov 0   ;;  %s3936_s0 = inlined_call_operand.vmem [shape: f32[2,20,20,4], index: 0, kind: input, shape index: {}]   ;;  %s3937_s1 = inlined_call_operand.vmem [shape: bf16[8,36], index: 1, kind: input, shape index: {}]   ;;  %s3938_s2 = inlined_call_operand.vmem [shape: f32[1,8,1], index: 2, kind: input, shape index: {}]   ;;  %s3939_s3 = inlined_call_operand.vmem [shape: f32[1,8,1], index: 3, kind: input, shape index: {}]   ;;  %s3940_s4 = inlined_call_operand.hbm [shape: f32[2,8,256], index: 4, kind: output, shape index: {}]  }
   0x1 LB: > { %s2570_s16 = sadd.s32 4294967295, %s2526_s15   ;;  %p1769_p0 = scmp.ge.s32.totalorder %s2526_s15, 1  ;;  %s2526_s15 = sphi %s2564_s15, %s15_s15  }
   0x2   : > { %p158_p1 = scmp.lt.s32.totalorder %s2526_s15, 3 }
   0x4   : > { %p159_p2 = pnand %p1769_p0, %p158_p1 }
   0x6   : > { %162 = sbr.rel (%p159_p2) target bundleno = 803 (0x323), region = 36 }
   0xb   : > { %p179_p3 = scmp.lt.s32.totalorder %s2570_s16, 1  ;;  %vm293_vm0 = vcmask 1045504   ;;  %s2528_s22 = smov 4   ;;  %vm374_vm1 = vcmask 1043456   ;;  %vm1308_vm2 = vcmask 64512   ;;  %vm1275_vm3 = vcmask 31744  }
   0xc   : > { %s2529_s23 = smov 8   ;;  %s2530_s24 = smov 12   ;;  %vm1341_vm4 = vcmask 97280   ;;  %vm1374_vm5 = vcmask 130048   ;;  %vm1407_vm6 = vcmask 162816   ;;  %vm1440_vm7 = vcmask 195584  }
   0xd   : > { %s180_s17 = scalar_select %p179_p3, %s2570_s16, 1  ;;  %vm1473_vm8 = vcmask 228352   ;;  %vm1506_vm9 = vcmask 261120   ;;  %vm1556_vm10 = vcmask 293888  }
   0xe   : > { %s2531_s25 = smov 16   ;;  %s2532_s26 = smov 20  }
   0xf   : > { %s1806_s18 = smul.u32 480, %s180_s17  ;;  %s2533_s27 = smov 24  }
  0x10   : > { %s2534_s28 = smov 28   ;;  %s2535_s29 = smov 32  }
  0x11   : > { %s2579_s21 = scalar_lea.vmem %s3936_s0, %s1806_s18  ;;  %s1779_s6 = sshll.u32 %s2570_s16, 4 }
  0x12   : > { %v2582_v0 = vld [vmem:[%s2579_s21 + $0x30] sm:$0xff]  ;;  %v2585_v1 = vld [vmem:[%s2579_s21 + $0x38] sm:$0xff]  ;;  %v2588_v2 = vld [vmem:[%s2579_s21 + $0x40] sm:$0xf]  ;;  %s1651_s7 = scalar_lea.vmem [#allocation2], %s1779_s6  ;;  %p1774_p4 = scmp.ne.s32.totalorder %s2570_s16, 1 }
  0x13   : > { %v304_v3 = vrot.slane %v2582_v0, 2  ;;  %v305_v4 = vrot.slane %v2585_v1, 2  ;;  %v307_v5 = vrot.slane %v2588_v2, 2  ;;  %v2594_v6 = vld [vmem:[%s2579_s21] sm:$0xff]  ;;  %v2597_v7 = vld [vmem:[%s2579_s21 + $0x8] sm:$0xff]  ;;  %v2608_v12 = vld [vmem:[%s2579_s21 + $0x50] sm:$0xff] }
  0x14   : > { %3990 = vst [vmem:[#allocation5_spill] sm:$0xff] %v2594_v6  ;;  %3991 = vst [vmem:[#allocation6_spill] sm:$0xff] %v2597_v7  ;;  %v2600_v8 = vld [vmem:[%s2579_s21 + $0x10] sm:$0xf]  ;;  %v294_v9 = vrot.slane %v2594_v6, 2  ;;  %v295_v10 = vrot.slane %v2597_v7, 2 }
  0x15   : > { %v2605_v11 = vld [vmem:[%s2579_s21 + $0x48] sm:$0xff]  ;;  %v306_v13 = vsel %vm293_vm0, %v304_v3, %v305_v4  ;;  %v308_v14 = vsel %vm293_vm0, %v305_v4, %v307_v5  ;;  %v297_v15 = vrot.slane %v2600_v8, 2  ;;  %v2614_v16 = vld [vmem:[%s2579_s21 + $0x58] sm:$0xf]  ;;  %v2620_v18 = vld [vmem:[%s2579_s21 + $0x20] sm:$0xff]  ;;  %v310_v26 = vrot.slane %v2608_v12, 2 }
  0x16   : > { %v2617_v17 = vld [vmem:[%s2579_s21 + $0x18] sm:$0xff]  ;;  %v2622_v19 = vpack.i.bf16 %v308_v14, %v306_v13  ;;  %v296_v20 = vsel %vm293_vm0, %v294_v9, %v295_v10  ;;  %v309_v21 = vrot.slane %v2605_v11, 2  ;;  %v2627_v22 = vld [vmem:[%s2579_s21 + $0x28] sm:$0xf]  ;;  %v2633_v24 = vld [vmem:[%s2579_s21 + $0x80] sm:$0xff]  ;;  %v312_v27 = vrot.slane %v2614_v16, 2 }
  0x17   : > { %3992 = vst [vmem:[#allocation7_spill] sm:$0xff] %v2617_v17  ;;  %v2630_v23 = vld [vmem:[%s2579_s21 + $0x78] sm:$0xff]  ;;  %v298_v25 = vsel %vm293_vm0, %v295_v10, %v297_v15  ;;  %v299_v28 = vrot.slane %v2617_v17, 2  ;;  %v2640_v29 = vld [vmem:[%s2579_s21 + $0x88] sm:$0xf]  ;;  %v300_v31 = vrot.slane %v2620_v18, 2 }
  0x18   : > { %3993 = vst [vmem:[#allocation8_spill] sm:$0xff] %v2622_v19  ;;  %1843 = vrot.lane.b32.xlu1 %v2622_v19, %s2528_s22  ;;  %v1832_v30 = vpack.i.bf16 %v298_v25, %v296_v20  ;;  %v302_v32 = vrot.slane %v2627_v22, 2  ;;  %v319_v33 = vrot.slane %v2630_v23, 2  ;;  %v2648_v34 = vld [vmem:[%s2579_s21 + $0x60] sm:$0xff]  ;;  %v2651_v35 = vld [vmem:[%s2579_s21 + $0x68] sm:$0xff]  ;;  %v311_v36 = vsel %vm293_vm0, %v309_v21, %v310_v26  ;;  %v2664_v42 = vld [vmem:[%s2579_s21 + $0xb0] sm:$0xff] }
  0x19   : > { %v313_v37 = vsel %vm293_vm0, %v310_v26, %v312_v27  ;;  %v320_v38 = vrot.slane %v2633_v24, 2  ;;  %v322_v39 = vrot.slane %v2640_v29, 2  ;;  %v2658_v40 = vld [vmem:[%s2579_s21 + $0x70] sm:$0xf]  ;;  %v2661_v41 = vld [vmem:[%s2579_s21 + $0xa8] sm:$0xff]  ;;  %v301_v44 = vsel %vm293_vm0, %v299_v28, %v300_v31  ;;  %v2678_v48 = vld [vmem:[%s2579_s21 + $0x98] sm:$0xff] }
  0x1a   : > { %1833 = vrot.lane.b32.xlu0 %v1832_v30, %s2528_s22  ;;  %v2667_v43 = vpack.i.bf16 %v313_v37, %v311_v36  ;;  %v303_v45 = vsel %vm293_vm0, %v300_v31, %v302_v32  ;;  %v2672_v46 = vld [vmem:[%s2579_s21 + $0xb8] sm:$0xf]  ;;  %v2675_v47 = vld [vmem:[%s2579_s21 + $0x90] sm:$0xff]  ;;  %v314_v52 = vrot.slane %v2648_v34, 2  ;;  %v2684_v53 = vld [vmem:[%s2579_s21 + $0xa0] sm:$0xf] }
  0x1b   : > { %v1837_v49 = vpack.i.bf16 %v303_v45, %v301_v44  ;;  %v321_v50 = vsel %vm293_vm0, %v319_v33, %v320_v38  ;;  %v323_v51 = vsel %vm293_vm0, %v320_v38, %v322_v39  ;;  %v2687_v54 = vld [vmem:[%s2579_s21 + $0xd8] sm:$0xff]  ;;  %v315_v56 = vrot.slane %v2651_v35, 2  ;;  %v2697_v59 = vld [vmem:[%s2579_s21 + $0xe0] sm:$0xff]  ;;  %v2704_v3 = vld [vmem:[%s2579_s21 + $0xe8] sm:$0xf] }
  0x1c   : > { %3994 = vst [vmem:[#allocation9_spill] sm:$0xff] %v2667_v43  ;;  %1848 = vrot.lane.b32.xlu1 %v2667_v43, %s2528_s22  ;;  %v2691_v55 = vpack.i.bf16 %v323_v51, %v321_v50  ;;  %v317_v57 = vrot.slane %v2658_v40, 2  ;;  %v329_v58 = vrot.slane %v2661_v41, 2  ;;  %v330_v60 = vrot.slane %v2664_v42, 2  ;;  %v2712_v13 = vld [vmem:[%s2579_s21 + $0xc0] sm:$0xff]  ;;  %v2715_v14 = vld [vmem:[%s2579_s21 + $0xc8] sm:$0xff] }
  0x1d   : > { %v332_v61 = vrot.slane %v2672_v46, 2  ;;  %v324_v62 = vrot.slane %v2675_v47, 2  ;;  %v325_v63 = vrot.slane %v2678_v48, 2  ;;  %v316_v4 = vsel %vm293_vm0, %v314_v52, %v315_v56  ;;  %v2718_v15 = vld [vmem:[%s2579_s21 + $0xd0] sm:$0xf]  ;;  %v2726_v27 = vld [vmem:[%s2579_s21 + $0x108] sm:$0xff] }
  0x1e   : > { %3995 = vst [vmem:[#allocation10_spill] sm:$0xff] %v2691_v55  ;;  %1838 = vrot.lane.b32.xlu0 %v1837_v49, %s2528_s22  ;;  %v318_v5 = vsel %vm293_vm0, %v315_v56, %v317_v57  ;;  %v327_v9 = vrot.slane %v2684_v53, 2  ;;  %v339_v10 = vrot.slane %v2687_v54, 2  ;;  %v331_v21 = vsel %vm293_vm0, %v329_v58, %v330_v60  ;;  %v2729_v28 = vld [vmem:[%s2579_s21 + $0x110] sm:$0xff]  ;;  %v2739_v36 = vld [vmem:[%s2579_s21 + $0x118] sm:$0xf] }
  0x1f   : > { %v2720_v20 = vpack.i.bf16 %v318_v5, %v316_v4  ;;  %v333_v25 = vsel %vm293_vm0, %v330_v60, %v332_v61  ;;  %v326_v26 = vsel %vm293_vm0, %v324_v62, %v325_v63  ;;  %v340_v32 = vrot.slane %v2697_v59, 2  ;;  %v2747_v45 = vld [vmem:[%s2579_s21 + $0xf0] sm:$0xff]  ;;  %v2750_v49 = vld [vmem:[%s2579_s21 + $0xf8] sm:$0xff]  ;;  %v2759_v57 = vld [vmem:[%s2579_s21 + $0x100] sm:$0xf] }
  0x20   : > { %1858 = vrot.lane.b32.xlu1 %v2691_v55, %s2528_s22  ;;  %v2733_v30 = vpack.i.bf16 %v333_v25, %v331_v21  ;;  %v328_v31 = vsel %vm293_vm0, %v325_v63, %v327_v9  ;;  %v342_v33 = vrot.slane %v2704_v3, 2  ;;  %v334_v38 = vrot.slane %v2712_v13, 2  ;;  %v2762_v58 = vld [vmem:[%s2579_s21 + $0x138] sm:$0xff]  ;;  %v2765_v60 = vld [vmem:[%s2579_s21 + $0x140] sm:$0xff]  ;;  %v2771_v4 = vld [vmem:[%s2579_s21 + $0x148] sm:$0xf] }
  0x21   : > { %3996 = vst [vmem:[#allocation11_spill] sm:$0xff] %v2720_v20  ;;  %v2741_v37 = vpack.i.bf16 %v328_v31, %v326_v26  ;;  %v335_v39 = vrot.slane %v2715_v14, 2  ;;  %v337_v44 = vrot.slane %v2718_v15, 2  ;;  %v341_v50 = vsel %vm293_vm0, %v339_v10, %v340_v32  ;;  %3999 = vst [vmem:[#allocation14_spill] sm:$0xff] %v2765_v60  ;;  %v2781_v25 = vld [vmem:[%s2579_s21 + $0x120] sm:$0xff]  ;;  %v2784_v26 = vld [vmem:[%s2579_s21 + $0x128] sm:$0xff] }
  0x22   : > { %3997 = vst [vmem:[#allocation12_spill] sm:$0xff] %v2733_v30  ;;  %1853 = vrot.lane.b32.xlu0 %v2720_v20, %s2528_s22  ;;  %v343_v51 = vsel %vm293_vm0, %v340_v32, %v342_v33  ;;  %v349_v52 = vrot.slane %v2726_v27, 2  ;;  %v350_v56 = vrot.slane %v2729_v28, 2  ;;  %v352_v63 = vrot.slane %v2739_v36, 2  ;;  %4001 = vst [vmem:[#allocation16_spill] sm:$0xff] %v2784_v26 }
  0x23   : > { %3998 = vst [vmem:[#allocation13_spill] sm:$0xff] %v2741_v37  ;;  %v336_v61 = vsel %vm293_vm0, %v334_v38, %v335_v39  ;;  %v338_v62 = vsel %vm293_vm0, %v335_v39, %v337_v44  ;;  %v2775_v5 = vpack.i.bf16 %v343_v51, %v341_v50  ;;  %v344_v10 = vrot.slane %v2747_v45, 2  ;;  %v2787_v31 = vld [vmem:[%s2579_s21 + $0x130] sm:$0xf]  ;;  %v2794_v44 = vld [vmem:[%s2579_s21 + $0x168] sm:$0xff] }
  0x24   : > { %1868 = vrot.lane.b32.xlu1 %v2733_v30, %s2528_s22  ;;  %v351_v9 = vsel %vm293_vm0, %v349_v52, %v350_v56  ;;  %v345_v21 = vrot.slane %v2750_v49, 2  ;;  %4002 = vst [vmem:[#allocation17_spill] sm:$0xff] %v2787_v31  ;;  %v353_v32 = vsel %vm293_vm0, %v350_v56, %v352_v63  ;;  %v347_v33 = vrot.slane %v2759_v57, 2  ;;  %v2797_v50 = vld [vmem:[%s2579_s21 + $0x170] sm:$0xff]  ;;  %v2806_v63 = vld [vmem:[%s2579_s21 + $0x178] sm:$0xf] }
  0x25   : > { %4000 = vst [vmem:[#allocation15_spill] sm:$0xff] %v2775_v5  ;;  %v359_v38 = vrot.slane %v2762_v58, 2  ;;  %v360_v39 = vrot.slane %v2765_v60, 2  ;;  %4003 = vst [vmem:[#allocation18_spill] sm:$0xff] %v2797_v50  ;;  %v2801_v51 = vpack.i.bf16 %v338_v62, %v336_v61  ;;  %v362_v56 = vrot.slane %v2771_v4, 2  ;;  %v2813_v30 = vld [vmem:[%s2579_s21 + $0x150] sm:$0xff] }
  0x26   : > { %1863 = vrot.lane.b32.xlu0 %v2741_v37, %s2528_s22  ;;  %v346_v52 = vsel %vm293_vm0, %v344_v10, %v345_v21  ;;  %v348_v19 = vsel %vm293_vm0, %v345_v21, %v347_v33  ;;  %v354_v43 = vrot.slane %v2781_v25, 2  ;;  %v355_v20 = vrot.slane %v2784_v26, 2  ;;  %v2816_v60 = vld [vmem:[%s2579_s21 + $0x158] sm:$0xff]  ;;  %v2825_v21 = vld [vmem:[%s2579_s21 + $0x160] sm:$0xf] }
  0x27   : > { %4004 = vst [vmem:[#allocation19_spill] sm:$0xff] %v2801_v51  ;;  %v357_v55 = vrot.slane %v2787_v31, 2  ;;  %4005 = vst [vmem:[#allocation20_spill] sm:$0xff] %v2816_v60  ;;  %v2820_v61 = vpack.i.bf16 %v353_v32, %v351_v9  ;;  %v369_v62 = vrot.slane %v2794_v44, 2  ;;  %v370_v10 = vrot.slane %v2797_v50, 2 }
  0x28   : > { %1878 = vrot.lane.b32.xlu1 %v2775_v5, %s2528_s22  ;;  %v361_v33 = vsel %vm293_vm0, %v359_v38, %v360_v39  ;;  %v363_v37 = vsel %vm293_vm0, %v360_v39, %v362_v56  ;;  %v372_v31 = vrot.slane %v2806_v63, 2  ;;  %v2832_v26 = vpack.i.bf16 %v348_v19, %v346_v52 }
  0x29   : > { %v364_v9 = vrot.slane %v2813_v30, 2  ;;  %v365_v32 = vrot.slane %v2816_v60, 2  ;;  %v388_v5 = vrot.slane %v2588_v2, 4  ;;  %v356_v50 = vsel %vm293_vm0, %v354_v43, %v355_v20 }
  0x2a   : > { %1873 = vrot.lane.b32.xlu0 %v2801_v51, %s2528_s22  ;;  %v358_v38 = vsel %vm293_vm0, %v355_v20, %v357_v55  ;;  %v367_v39 = vrot.slane %v2825_v21, 2  ;;  %v378_v56 = vrot.slane %v2600_v8, 4  ;;  %v2843_v19 = vpack.i.bf16 %v363_v37, %v361_v33 }
  0x2b   : > { %v371_v52 = vsel %vm293_vm0, %v369_v62, %v370_v10  ;;  %v373_v51 = vsel %vm293_vm0, %v370_v10, %v372_v31  ;;  %v380_v60 = vrot.slane %v2617_v17, 4  ;;  %v381_v2 = vrot.slane %v2620_v18, 4 }
  0x2c   : > { %1888 = vrot.lane.b32.xlu1 %v2820_v61, %s2528_s22  ;;  %4006 = vst [vmem:[#allocation21_spill] sm:$0xff] %v2843_v19  ;;  %v383_v43 = vrot.slane %v2627_v22, 4  ;;  %v390_v55 = vrot.slane %v2605_v11, 4  ;;  %v2853_v8 = vpack.i.bf16 %v358_v38, %v356_v50  ;;  %v366_v20 = vsel %vm293_vm0, %v364_v9, %v365_v32 }
  0x2d   : > { %v391_v37 = vrot.slane %v2608_v12, 4  ;;  %v393_v62 = vrot.slane %v2614_v16, 4  ;;  %v368_v31 = vsel %vm293_vm0, %v365_v32, %v367_v39  ;;  %v375_v10 = vrot.slane %v2594_v6, 4 }
  0x2e   : > { %1883 = vrot.lane.b32.xlu0 %v2832_v26, %s2528_s22  ;;  %4007 = vst [vmem:[#allocation22_spill] sm:$0xff] %v2853_v8  ;;  %v376_v33 = vrot.slane %v2597_v7, 4  ;;  %v385_v22 = vrot.slane %v2582_v0, 4  ;;  %v2864_v17 = vpack.i.bf16 %v373_v51, %v371_v52  ;;  %v386_v38 = vrot.slane %v2585_v1, 4 }
  0x2f   : > { %v392_v50 = vsel %vm374_vm1, %v390_v55, %v391_v37  ;;  %v394_v9 = vsel %vm374_vm1, %v391_v37, %v393_v62  ;;  %v382_v16 = vsel %vm374_vm1, %v380_v60, %v381_v2  ;;  %v384_v32 = vsel %vm374_vm1, %v381_v2, %v383_v43 }
  0x30   : > { %1898 = vrot.lane.b32.xlu1 %v2843_v19, %s2528_s22  ;;  %v2871_v39 = vpack.i.bf16 %v394_v9, %v392_v50  ;;  %v2875_v6 = vpack.i.bf16 %v368_v31, %v366_v20  ;;  %v387_v51 = vsel %vm374_vm1, %v385_v22, %v386_v38  ;;  %v389_v52 = vsel %vm374_vm1, %v386_v38, %v388_v5 }
  0x31   : > { %v377_v55 = vsel %vm374_vm1, %v375_v10, %v376_v33  ;;  %v379_v37 = vsel %vm374_vm1, %v376_v33, %v378_v56  ;;  %v2881_v62 = vpack.i.bf16 %v389_v52, %v387_v51  ;;  %v1917_v60 = vpack.i.bf16 %v384_v32, %v382_v16 }
  0x32   : > { %4008 = vst [vmem:[#allocation23_spill] sm:$0xff] %v2871_v39  ;;  %1893 = vrot.lane.b32.xlu0 %v2853_v8, %s2528_s22  ;;  %4009 = vst [vmem:[#allocation24_spill] sm:$0xff] %v2875_v6  ;;  %v400_v2 = vrot.slane %v2630_v23, 4  ;;  %v401_v43 = vrot.slane %v2633_v24, 4  ;;  %v403_v20 = vrot.slane %v2640_v29, 4  ;;  %v1912_v5 = vpack.i.bf16 %v379_v37, %v377_v55 }
  0x33   : > { %4010 = vst [vmem:[#allocation25_spill] sm:$0xff] %v2881_v62  ;;  %v395_v31 = vrot.slane %v2648_v34, 4  ;;  %v396_v56 = vrot.slane %v2651_v35, 4  ;;  %v398_v10 = vrot.slane %v2658_v40, 4  ;;  %v410_v50 = vrot.slane %v2661_v41, 4 }
  0x34   : > { %1908 = vrot.lane.b32.xlu1 %v2864_v17, %s2528_s22  ;;  %v402_v33 = vsel %vm374_vm1, %v400_v2, %v401_v43  ;;  %v404_v22 = vsel %vm374_vm1, %v401_v43, %v403_v20  ;;  %v411_v29 = vrot.slane %v2664_v42, 4  ;;  %v413_v9 = vrot.slane %v2672_v46, 4 }
  0x35   : > { %v405_v38 = vrot.slane %v2675_v47, 4  ;;  %v406_v16 = vrot.slane %v2678_v48, 4  ;;  %v408_v40 = vrot.slane %v2684_v53, 4  ;;  %v397_v32 = vsel %vm374_vm1, %v395_v31, %v396_v56 }
  0x36   : > { %1903 = vrot.lane.b32.xlu0 %v2875_v6, %s2528_s22  ;;  %v399_v51 = vsel %vm374_vm1, %v396_v56, %v398_v10  ;;  %v2907_v52 = vpack.i.bf16 %v404_v22, %v402_v33  ;;  %v420_v55 = vrot.slane %v2687_v54, 4  ;;  %v421_v46 = vrot.slane %v2697_v59, 4  ;;  %v3008_v6 = vld [vmem:[%s2579_s21 + $0x1d8] sm:$0xf] }
  0x37   : > { %v423_v37 = vrot.slane %v2704_v3, 4  ;;  %v414_v2 = vsel %vm374_vm1, %v411_v29, %v413_v9  ;;  %v2916_v53 = vpack.i.bf16 %v399_v51, %v397_v32  ;;  %v407_v43 = vsel %vm374_vm1, %v405_v38, %v406_v16 }
  0x38   : > { %1918 = vrot.lane.b32.xlu1 %v1917_v60, %s2529_s23  ;;  %4011 = vst [vmem:[#allocation26_spill] sm:$0xff] %v2907_v52  ;;  %v412_v60 = vsel %vm374_vm1, %v410_v50, %v411_v29  ;;  %v409_v20 = vsel %vm374_vm1, %v406_v16, %v408_v40  ;;  %v416_v31 = vrot.slane %v2715_v14, 4  ;;  %v418_v56 = vrot.slane %v2718_v15, 4 }
  0x39   : > { %4012 = vst [vmem:[#allocation27_spill] sm:$0xff] %v2916_v53  ;;  %v430_v3 = vrot.slane %v2726_v27, 4  ;;  %v431_v10 = vrot.slane %v2729_v28, 4  ;;  %v2927_v33 = vpack.i.bf16 %v414_v2, %v412_v60  ;;  %v422_v22 = vsel %vm374_vm1, %v420_v55, %v421_v46 }
  0x3a   : > { %1913 = vrot.lane.b32.xlu0 %v1912_v5, %s2529_s23  ;;  %v415_v5 = vrot.slane %v2712_v13, 4  ;;  %v424_v50 = vsel %vm374_vm1, %v421_v46, %v423_v37  ;;  %v433_v29 = vrot.slane %v2739_v36, 4  ;;  %v425_v9 = vrot.slane %v2747_v45, 4  ;;  %v4014_v46 = vld [vmem:[#allocation14_spill] sm:$0xff] }
  0x3b   : > { %v426_v38 = vrot.slane %v2750_v49, 4  ;;  %v428_v15 = vrot.slane %v2759_v57, 4  ;;  %v2937_v16 = vpack.i.bf16 %v409_v20, %v407_v43  ;;  %v2939_v40 = vpack.i.bf16 %v424_v50, %v422_v22 }
  0x3c   : > { %1928 = vrot.lane.b32.xlu1 %v2871_v39, %s2529_s23  ;;  %v417_v32 = vsel %vm374_vm1, %v415_v5, %v416_v31  ;;  %v419_v51 = vsel %vm374_vm1, %v416_v31, %v418_v56  ;;  %v432_v55 = vsel %vm374_vm1, %v430_v3, %v431_v10  ;;  %v434_v36 = vsel %vm374_vm1, %v431_v10, %v433_v29  ;;  %v4015_v31 = vld [vmem:[#allocation16_spill] sm:$0xff]  ;;  %v4016_v3 = vld [vmem:[#allocation17_spill] sm:$0xff] }
  0x3d   : > { %4013 = vst [vmem:[#allocation28_spill] sm:$0xff] %v2937_v16  ;;  %v440_v57 = vrot.slane %v2762_v58, 4  ;;  %v441_v37 = vrot.slane %v4014_v46, 4  ;;  %v443_v60 = vrot.slane %v2771_v4, 4  ;;  %v427_v2 = vsel %vm374_vm1, %v425_v9, %v426_v38 }
  0x3e   : > { %1923 = vrot.lane.b32.xlu0 %v2881_v62, %s2529_s23  ;;  %v429_v43 = vsel %vm374_vm1, %v426_v38, %v428_v15  ;;  %v2954_v20 = vpack.i.bf16 %v419_v51, %v417_v32  ;;  %v435_v5 = vrot.slane %v2781_v25, 4  ;;  %v436_v56 = vrot.slane %v4015_v31, 4  ;;  %v2969_v38 = vld [vmem:[%s2579_s21 + $0x198] sm:$0xff]  ;;  %v2972_v15 = vld [vmem:[%s2579_s21 + $0x1a0] sm:$0xff]  ;;  %v4017_v32 = vld [vmem:[#allocation18_spill] sm:$0xff] }
  0x3f   : > { %v438_v10 = vrot.slane %v4016_v3, 4  ;;  %v2959_v22 = vpack.i.bf16 %v434_v36, %v432_v55  ;;  %v2963_v4 = vpack.i.bf16 %v429_v43, %v427_v2  ;;  %v442_v50 = vsel %vm374_vm1, %v440_v57, %v441_v37  ;;  %v2977_v36 = vld [vmem:[%s2579_s21 + $0x1a8] sm:$0xf]  ;;  %v2988_v62 = vld [vmem:[%s2579_s21 + $0x1d0] sm:$0xff] }
  0x40   : > { %1938 = vrot.lane.b32.xlu1 %v2907_v52, %s2529_s23  ;;  %v444_v29 = vsel %vm374_vm1, %v441_v37, %v443_v60  ;;  %v450_v9 = vrot.slane %v2794_v44, 4  ;;  %v451_v51 = vrot.slane %v4017_v32, 4  ;;  %v453_v55 = vrot.slane %v2806_v63, 4  ;;  %v4018_v63 = vld [vmem:[#allocation20_spill] sm:$0xff]  ;;  %v2994_v52 = vld [vmem:[%s2579_s21 + $0x1c8] sm:$0xff] }
  0x41   : > { %v476_v2 = vrot.slane %v2969_v38, 4  ;;  %v477_v43 = vrot.slane %v2972_v15, 4  ;;  %v437_v57 = vsel %vm374_vm1, %v435_v5, %v436_v56  ;;  %v439_v37 = vsel %vm374_vm1, %v436_v56, %v438_v10 }
  0x42   : > { %1933 = vrot.lane.b32.xlu0 %v2916_v53, %s2529_s23  ;;  %v445_v60 = vrot.slane %v2813_v30, 4  ;;  %v479_v3 = vrot.slane %v2977_v36, 4  ;;  %v446_v39 = vrot.slane %v4018_v63, 4  ;;  %v448_v53 = vrot.slane %v2825_v21, 4 }
  0x43   : > { %v478_v8 = vsel %vm374_vm1, %v476_v2, %v477_v43  ;;  %v503_v5 = vrot.slane %v2988_v62, 4  ;;  %v2999_v56 = vpack.i.bf16 %v444_v29, %v442_v50  ;;  %v502_v19 = vrot.slane %v2994_v52, 4 }
  0x44   : > { %1948 = vrot.lane.b32.xlu1 %v2927_v33, %s2529_s23  ;;  %v480_v10 = vsel %vm374_vm1, %v477_v43, %v479_v3  ;;  %v452_v21 = vsel %vm374_vm1, %v450_v9, %v451_v51  ;;  %v454_v2 = vsel %vm374_vm1, %v451_v51, %v453_v55  ;;  %v3012_v7 = vpack.i.bf16 %v439_v37, %v437_v57  ;;  %v3024_v51 = vld [vmem:[%s2579_s21 + $0x188] sm:$0xff]  ;;  %v3034_v57 = vld [vmem:[%s2579_s21 + $0x190] sm:$0xf] }
  0x45   : > { %4019 = vst [vmem:[#allocation14_spill] sm:$0xff] %v2999_v56  ;;  %v3015_v50 = vsel %vm374_vm1, %v502_v19, %v503_v5  ;;  %v505_v29 = vrot.slane %v3008_v6, 4  ;;  %v447_v43 = vsel %vm374_vm1, %v445_v60, %v446_v39  ;;  %v449_v9 = vsel %vm374_vm1, %v446_v39, %v448_v53 }
  0x46   : > { %1943 = vrot.lane.b32.xlu0 %v2937_v16, %s2529_s23  ;;  %v3005_v16 = vpack.i.bf16 %v480_v10, %v478_v8  ;;  %4020 = vst [vmem:[#allocation16_spill] sm:$0xff] %v3012_v7  ;;  %v3021_v8 = vld [vmem:[%s2579_s21 + $0x180] sm:$0xff]  ;;  %v3028_v55 = vpack.i.bf16 %v454_v2, %v452_v21  ;;  %v472_v39 = vrot.slane %v3024_v51, 4  ;;  %v474_v60 = vrot.slane %v3034_v57, 4  ;;  %v3047_v10 = vld [vmem:[%s2579_s21 + $0x1b8] sm:$0xff]  ;;  %v3051_v2 = vld [vmem:[%s2579_s21 + $0x1b0] sm:$0xff] }
  0x47   : > { %v3031_v19 = vsel %vm374_vm1, %v503_v5, %v505_v29  ;;  %v471_v37 = vrot.slane %v3021_v8, 4  ;;  %v3043_v3 = vpack.i.bf16 %v449_v9, %v447_v43  ;;  %v498_v29 = vrot.slane %v3047_v10, 4  ;;  %v3062_v9 = vld [vmem:[%s2579_s21 + $0x1c0] sm:$0xf] }
  0x48   : > { %1958 = vrot.lane.b32.xlu1 %v2939_v40, %s2529_s23  ;;  %v475_v21 = vsel %vm374_vm1, %v472_v39, %v474_v60  ;;  %v1997_v53 = vpack.i.bf16 %v2608_v12, %v2605_v11  ;;  %v497_v43 = vrot.slane %v3051_v2, 4 }
  0x49   : > { %4021 = vst [vmem:[#allocation17_spill] sm:$0xff] %v3043_v3  ;;  %v473_v5 = vsel %vm374_vm1, %v471_v37, %v472_v39  ;;  %v500_v37 = vrot.slane %v3062_v9, 4  ;;  %v1992_v39 = vpack.i.bf16 %v2585_v1, %v2582_v0 }
  0x4a   : > { %1953 = vrot.lane.b32.xlu0 %v2954_v20, %s2529_s23  ;;  %v3070_v60 = vsel %vm374_vm1, %v497_v43, %v498_v29 }
  0x4c   : > { %1968 = vrot.lane.b32.xlu1 %v2959_v22, %s2529_s23 }
  0x4e   : > { %1963 = vrot.lane.b32.xlu0 %v2963_v4, %s2529_s23 }
  0x50   : > { %1978 = vrot.lane.b32.xlu1 %v2999_v56, %s2529_s23  ;;  %v3058_v56 = vpack.i.bf16 %v475_v21, %v473_v5  ;;  %v2007_v5 = vpack.i.bf16 %v2633_v24, %v2630_v23  ;;  %v3092_v23 = vpack.i.bf16 %v2697_v59, %v2687_v54  ;;  %v3097_v24 = vpack.i.bf16 %v2715_v14, %v2712_v13 }
  0x52   : > { %1973 = vrot.lane.b32.xlu0 %v3012_v7, %s2529_s23  ;;  %v3073_v7 = vsel %vm374_vm1, %v498_v29, %v500_v37  ;;  %v2017_v29 = vpack.i.bf16 %v2664_v42, %v2661_v41  ;;  %v2047_v41 = vpack.i.bf16 %v4014_v46, %v2762_v58  ;;  %v2042_v42 = vpack.i.bf16 %v4015_v31, %v2781_v25  ;;  %v4022_v31 = vld [vmem:[#allocation15_spill] sm:$0xff] }
  0x53   : > { %v2167_v21 = vpack.i.bf16 %v3073_v7, %v3070_v60  ;;  %v466_v58 = vrot.slane %v2969_v38, 2  ;;  %v467_v46 = vrot.slane %v2972_v15, 2  ;;  %v3135_v25 = vpack.i.bf16 %v2972_v15, %v2969_v38 }
  0x54   : > { %1988 = vrot.lane.b32.xlu1 %v3028_v55, %s2529_s23  ;;  %v493_v38 = vrot.slane %v2988_v62, 2  ;;  %v492_v15 = vrot.slane %v2994_v52, 2 }
  0x56   : > { %1983 = vrot.lane.b32.xlu0 %v3043_v3, %s2529_s23  ;;  %v2002_v3 = vpack.i.bf16 %v2651_v35, %v2648_v34  ;;  %v2037_v34 = vpack.i.bf16 %v2729_v28, %v2726_v27  ;;  %v3107_v35 = vpack.i.bf16 %v2750_v49, %v2747_v45  ;;  %v494_v43 = vsel %vm293_vm0, %v492_v15, %v493_v38 }
  0x58   : > { %1998 = vrot.lane.b32.xlu1 %v1997_v53, %s2530_s24  ;;  %v2012_v53 = vpack.i.bf16 %v2678_v48, %v2675_v47  ;;  %v3119_v47 = vpack.i.bf16 %v4017_v32, %v2794_v44  ;;  %v3124_v48 = vpack.i.bf16 %v4018_v63, %v2813_v30  ;;  %v468_v44 = vsel %vm293_vm0, %v466_v58, %v467_v46 }
  0x59   : > { %v2092_v63 = vpack.i.bf16 %v2988_v62, %v2994_v52  ;;  %v3169_v62 = vpack.i.bf16 %v3024_v51, %v3021_v8  ;;  %v490_v58 = vrot.slane %v3062_v9, 2 }
  0x5a   : > { %1993 = vrot.lane.b32.xlu0 %v1992_v39, %s2530_s24  ;;  %v461_v39 = vrot.slane %v3021_v8, 2 }
  0x5c   : > { %2008 = vrot.lane.b32.xlu1 %v2007_v5, %s2530_s24  ;;  %v464_v5 = vrot.slane %v3034_v57, 2 }
  0x5e   : > { %2003 = vrot.lane.b32.xlu0 %v2002_v3, %s2530_s24  ;;  %v469_v3 = vrot.slane %v2977_v36, 2  ;;  %v495_v36 = vrot.slane %v3008_v6, 2  ;;  %v462_v6 = vrot.slane %v3024_v51, 2  ;;  %v488_v51 = vrot.slane %v3047_v10, 2 }
  0x60   : > { %2018 = vrot.lane.b32.xlu1 %v2017_v29, %s2530_s24  ;;  %v470_v30 = vsel %vm293_vm0, %v467_v46, %v469_v3  ;;  %v496_v37 = vsel %vm293_vm0, %v493_v38, %v495_v36  ;;  %v463_v52 = vsel %vm293_vm0, %v461_v39, %v462_v6  ;;  %v4024_v46 = vld [vmem:[#allocation19_spill] sm:$0xff] }
  0x61   : > { %v3143_v32 = vpack.i.bf16 %v470_v30, %v468_v44  ;;  %v2102_v29 = vpack.i.bf16 %v496_v37, %v494_v43  ;;  %v491_v30 = vsel %vm293_vm0, %v488_v51, %v490_v58  ;;  %v4025_v37 = vld [vmem:[#allocation12_spill] sm:$0xff] }
  0x62   : > { %2013 = vrot.lane.b32.xlu0 %v2012_v53, %s2530_s24  ;;  %v465_v53 = vsel %vm293_vm0, %v462_v6, %v464_v5 }
  0x63   : > { %v3176_v57 = vpack.i.bf16 %v465_v53, %v463_v52 }
  0x64   : > { %2028 = vrot.lane.b32.xlu1 %v3092_v23, %s2530_s24 }
  0x66   : > { %2023 = vrot.lane.b32.xlu0 %v3097_v24, %s2530_s24 }
  0x68   : > { %2038 = vrot.lane.b32.xlu1 %v2037_v34, %s2530_s24 }
  0x6a   : > { %2033 = vrot.lane.b32.xlu0 %v3107_v35, %s2530_s24 }
  0x6c   : > { %2048 = vrot.lane.b32.xlu1 %v2047_v41, %s2530_s24 }
  0x6e   : > { %2043 = vrot.lane.b32.xlu0 %v2042_v42, %s2530_s24  ;;  %v487_v42 = vrot.slane %v3051_v2, 2 }
  0x70   : > { %2058 = vrot.lane.b32.xlu1 %v3119_v47, %s2530_s24 }
  0x72   : > { %2053 = vrot.lane.b32.xlu0 %v3124_v48, %s2530_s24 }
  0x74   : > { %2068 = vrot.lane.b32.xlu1 %v4022_v31, %s2531_s25 }
  0x76   : > { %2063 = vrot.lane.b32.xlu0 %v3135_v25, %s2530_s24 }
  0x78   : > { %2078 = vrot.lane.b32.xlu1 %v2939_v40, %s2532_s26 }
  0x7a   : > { %2073 = vrot.lane.b32.xlu0 %v3143_v32, %s2531_s25 }
  0x7c   : > { %2088 = vrot.lane.b32.xlu1 %v2037_v34, %s2533_s27  ;;  %v4023_v34 = vpack.i.bf16 %v3031_v19, %v3015_v50  ;;  %v2147_v50 = vpack.i.bf16 %v3047_v10, %v3051_v2  ;;  %v489_v19 = vsel %vm293_vm0, %v487_v42, %v488_v51 }
  0x7d   : > { %v2157_v15 = vpack.i.bf16 %v491_v30, %v489_v19 }
  0x7e   : > { %2083 = vrot.lane.b32.xlu0 %v3005_v16, %s2532_s26 }
  0x80   : > { %2098 = vrot.lane.b32.xlu1 %v2820_v61, %s2534_s28 }
  0x82   : > { %2093 = vrot.lane.b32.xlu0 %v2092_v63, %s2533_s27 }
  0x84   : > { %2108 = vrot.lane.b32.xlu1 %v2959_v22, %s2535_s29 }
  0x86   : > { %2103 = vrot.lane.b32.xlu0 %v2102_v29, %s2534_s28 }
  0x88   : > { %2118 = vrot.lane.b32.xlu1 %v3169_v62, %s2530_s24 }
  0x8a   : > { %2113 = vrot.lane.b32.xlu0 %v4023_v34, %s2535_s29  ;;  %v3182_v41 = vpop.permute.xlu1 %1843 }
  0x8c   : > { %v1834_v8 = vpop.permute.xlu0 %1833  ;;  %2128 = vrot.lane.b32.xlu1 %v3176_v57, %s2531_s25 }
  0x8d   : > { %v1836_v29 = vunpack.i.h.bf16 %v1834_v8  ;;  %v1835_v52 = vunpack.i.l.bf16 %v1834_v8 }
  0x8e   : > { %2123 = vrot.lane.b32.xlu0 %v4024_v46, %s2531_s25  ;;  %v3191_v3 = vpop.permute.xlu1 %1848 }
  0x8f   : > { %v1851_v42 = vunpack.i.h.bf16 %v3191_v3  ;;  %v1850_v58 = vunpack.i.l.bf16 %v3191_v3  ;;  %v1846_v3 = vunpack.i.h.bf16 %v3182_v41 }
  0x90   : > { %v1839_v44 = vpop.permute.xlu0 %1838  ;;  %2138 = vrot.lane.b32.xlu1 %v3058_v56, %s2532_s26 }
  0x91   : > { %v1841_v60 = vunpack.i.h.bf16 %v1839_v44 }
  0x92   : > { %2133 = vrot.lane.b32.xlu0 %v2954_v20, %s2532_s26  ;;  %v3201_v9 = vpop.permute.xlu1 %1858 }
  0x94   : > { %v3203_v38 = vpop.permute.xlu0 %1853  ;;  %2148 = vrot.lane.b32.xlu1 %v2147_v50, %s2533_s27  ;;  %v4026_v50 = vld [vmem:[#allocation7_spill] sm:$0xff] }
  0x96   : > { %2143 = vrot.lane.b32.xlu0 %v3107_v35, %s2533_s27  ;;  %v3208_v36 = vpop.permute.xlu1 %1868 }
  0x98   : > { %v3210_v10 = vpop.permute.xlu0 %1863  ;;  %2158 = vrot.lane.b32.xlu1 %v2157_v15, %s2534_s28 }
  0x9a   : > { %2153 = vrot.lane.b32.xlu0 %v2832_v26, %s2534_s28  ;;  %v3215_v2 = vpop.permute.xlu1 %1878 }
  0x9c   : > { %v3217_v63 = vpop.permute.xlu0 %1873  ;;  %2168 = vrot.lane.b32.xlu1 %v2167_v21, %s2535_s29  ;;  %v1840_v21 = vunpack.i.l.bf16 %v1839_v44  ;;  %v1279_v44 = vsel %vm1275_vm3, %v2620_v18, %v1841_v60  ;;  %v4027_v18 = vld [vmem:[#allocation6_spill] sm:$0xff] }
  0x9d   : > { %v1277_v60 = vsel %vm1275_vm3, %v4027_v18, %v1836_v29  ;;  %v1282_v29 = vsel %vm1275_vm3, %v2605_v11, %v1850_v58  ;;  %v1281_v18 = vsel %vm1275_vm3, %v2585_v1, %v1846_v3  ;;  %v4031_v1 = vld [vmem:[#allocation13_spill] sm:$0xff]  ;;  %v1880_v3 = vunpack.i.l.bf16 %v3215_v2 }
  0x9e   : > { %2163 = vrot.lane.b32.xlu0 %v2963_v4, %s2535_s29  ;;  %v3225_v35 = vpop.permute.xlu1 %1888 }
  0xa0   : > { %v3227_v43 = vpop.permute.xlu0 %1883  ;;  %2178 = vrot.lane.b32.xlu1 %v2864_v17, %s2531_s25 }
  0xa2   : > { %2173 = vrot.lane.b32.xlu0 %v4025_v37, %s2531_s25  ;;  %v3233_v39 = vpop.permute.xlu1 %1898 }
  0xa4   : > { %v3235_v6 = vpop.permute.xlu0 %1893  ;;  %2188 = vrot.lane.b32.xlu1 %v3028_v55, %s2532_s26 }
  0xa6   : > { %2183 = vrot.lane.b32.xlu0 %v2927_v33, %s2532_s26  ;;  %v3241_v7 = vpop.permute.xlu1 %1908 }
  0xa8   : > { %v3243_v5 = vpop.permute.xlu0 %1903  ;;  %2198 = vrot.lane.b32.xlu1 %v3135_v25, %s2533_s27  ;;  %v1278_v25 = vsel %vm1275_vm3, %v4026_v50, %v1840_v21  ;;  %v4028_v21 = vld [vmem:[#allocation5_spill] sm:$0xff] }
  0xa9   : > { %v1276_v50 = vsel %vm1275_vm3, %v4028_v21, %v1835_v52  ;;  %v4032_v21 = vld [vmem:[#allocation17_spill] sm:$0xff] }
  0xaa   : > { %2193 = vrot.lane.b32.xlu0 %v3092_v23, %s2533_s27  ;;  %v1919_v53 = vpop.permute.xlu1 %1918 }
  0xab   : > { %v1921_v34 = vunpack.i.h.bf16 %v1919_v53  ;;  %v1920_v51 = vunpack.i.l.bf16 %v1919_v53  ;;  %v1845_v53 = vunpack.i.l.bf16 %v3182_v41  ;;  %v1283_v41 = vsel %vm1275_vm3, %v2608_v12, %v1851_v42 }
  0xac   : > { %v1914_v19 = vpop.permute.xlu0 %1913  ;;  %2208 = vrot.lane.b32.xlu1 %v3143_v32, %s2534_s28 }
  0xad   : > { %v3258_v23 = vsel %vm1308_vm2, %v1278_v25, %v1920_v51  ;;  %v3261_v8 = vsel %vm1308_vm2, %v1279_v44, %v1921_v34  ;;  %v1916_v30 = vunpack.i.h.bf16 %v1914_v19  ;;  %v1915_v15 = vunpack.i.l.bf16 %v1914_v19 }
  0xae   : > { %2203 = vrot.lane.b32.xlu0 %v4022_v31, %s2534_s28  ;;  %v1929_v32 = vpop.permute.xlu1 %1928  ;;  %v1280_v12 = vsel %vm1275_vm3, %v2582_v0, %v1845_v53 }
  0xaf   : > { %v3272_v51 = vsel %vm1308_vm2, %v1276_v50, %v1915_v15  ;;  %v3275_v34 = vsel %vm1308_vm2, %v1277_v60, %v1916_v30  ;;  %v1931_v44 = vunpack.i.h.bf16 %v1929_v32  ;;  %v1930_v25 = vunpack.i.l.bf16 %v1929_v32  ;;  %v4030_v60 = vld [vmem:[#allocation24_spill] sm:$0xff] }
  0xb0   : > { %v1924_v19 = vpop.permute.xlu0 %1923  ;;  %2218 = vrot.lane.b32.xlu1 %v3005_v16, %s2535_s29  ;;  %v1876_v50 = vunpack.i.h.bf16 %v3217_v63  ;;  %v1875_v32 = vunpack.i.l.bf16 %v3217_v63 }
  0xb1   : > { %v3284_v31 = vsel %vm1308_vm2, %v1283_v41, %v1931_v44  ;;  %v3287_v52 = vsel %vm1308_vm2, %v1282_v29, %v1930_v25  ;;  %v1926_v30 = vunpack.i.h.bf16 %v1924_v19  ;;  %v1925_v15 = vunpack.i.l.bf16 %v1924_v19  ;;  %v4033_v44 = vld [vmem:[#allocation28_spill] sm:$0xff] }
  0xb2   : > { %2213 = vrot.lane.b32.xlu0 %v2939_v40, %s2535_s29  ;;  %v3295_v11 = vpop.permute.xlu1 %1938  ;;  %v1881_v40 = vunpack.i.h.bf16 %v3215_v2  ;;  %v1294_v2 = vsel %vm1275_vm3, %v2687_v54, %v1880_v3  ;;  %v1292_v54 = vsel %vm1275_vm3, %v2712_v13, %v1875_v32 }
  0xb3   : > { %v3298_v16 = vsel %vm1308_vm2, %v1281_v18, %v1926_v30  ;;  %v3301_v42 = vsel %vm1308_vm2, %v1280_v12, %v1925_v15  ;;  %v1891_v30 = vunpack.i.h.bf16 %v3225_v35  ;;  %v1890_v15 = vunpack.i.l.bf16 %v3225_v35 }
  0xb4   : > { %v3303_v58 = vpop.permute.xlu0 %1933  ;;  %2228 = vrot.lane.b32.xlu1 %v4030_v60, %s2531_s25  ;;  %v1295_v19 = vsel %vm1275_vm3, %v2697_v59, %v1881_v40  ;;  %v1293_v59 = vsel %vm1275_vm3, %v2715_v14, %v1876_v50  ;;  %v1886_v35 = vunpack.i.h.bf16 %v3227_v43  ;;  %v1885_v40 = vunpack.i.l.bf16 %v3227_v43 }
  0xb5   : > { %4029 = vst [vmem:[#allocation18_spill] sm:$0xff] %v3303_v58  ;;  %v1299_v14 = vsel %vm1275_vm3, %v2729_v28, %v1891_v30  ;;  %v1298_v13 = vsel %vm1275_vm3, %v2726_v27, %v1890_v15 }
  0xb6   : > { %2223 = vrot.lane.b32.xlu0 %v4031_v1, %s2531_s25  ;;  %v3309_v0 = vpop.permute.xlu1 %1948  ;;  %v1296_v28 = vsel %vm1275_vm3, %v2747_v45, %v1885_v40 }
  0xb8   : > { %v3313_v53 = vpop.permute.xlu0 %1943  ;;  %2238 = vrot.lane.b32.xlu1 %v4032_v21, %s2532_s26 }
  0xba   : > { %2233 = vrot.lane.b32.xlu0 %v4033_v44, %s2532_s26  ;;  %v1959_v25 = vpop.permute.xlu1 %1958 }
  0xbb   : > { %v1961_v41 = vunpack.i.h.bf16 %v1959_v25  ;;  %v1960_v29 = vunpack.i.l.bf16 %v1959_v25 }
  0xbc   : > { %v1954_v18 = vpop.permute.xlu0 %1953  ;;  %2248 = vrot.lane.b32.xlu1 %v3169_v62, %s2533_s27 }
  0xbd   : > { %v3330_v63 = vsel %vm1308_vm2, %v1295_v19, %v1961_v41  ;;  %v3333_v12 = vsel %vm1308_vm2, %v1294_v2, %v1960_v29  ;;  %v1956_v25 = vunpack.i.h.bf16 %v1954_v18  ;;  %v1955_v58 = vunpack.i.l.bf16 %v1954_v18  ;;  %v4035_v18 = vld [vmem:[#allocation10_spill] sm:$0xff] }
  0xbe   : > { %2243 = vrot.lane.b32.xlu0 %v3097_v24, %s2533_s27  ;;  %v1969_v62 = vpop.permute.xlu1 %1968  ;;  %v1297_v2 = vsel %vm1275_vm3, %v2750_v49, %v1886_v35  ;;  %v4036_v35 = vld [vmem:[#allocation14_spill] sm:$0xff] }
  0xbf   : > { %v3344_v3 = vsel %vm1308_vm2, %v1292_v54, %v1955_v58  ;;  %v3347_v41 = vsel %vm1308_vm2, %v1293_v59, %v1956_v25  ;;  %v1971_v29 = vunpack.i.h.bf16 %v1969_v62  ;;  %v1970_v19 = vunpack.i.l.bf16 %v1969_v62 }
  0xc0   : > { %v1964_v50 = vpop.permute.xlu0 %1963  ;;  %2258 = vrot.lane.b32.xlu1 %v3176_v57, %s2534_s28 }
  0xc1   : > { %v3356_v24 = vsel %vm1308_vm2, %v1299_v14, %v1971_v29  ;;  %v3359_v43 = vsel %vm1308_vm2, %v1298_v13, %v1970_v19  ;;  %v1966_v58 = vunpack.i.h.bf16 %v1964_v50  ;;  %v1965_v32 = vunpack.i.l.bf16 %v1964_v50  ;;  %v4039_v19 = vld [vmem:[#allocation26_spill] sm:$0xff]  ;;  %v3405_v50 = vld [vmem:[%s2579_s21 + $0xb0] sm:$0xff] }
  0xc2   : > { %2253 = vrot.lane.b32.xlu0 %v4024_v46, %s2534_s28  ;;  %v3367_v27 = vpop.permute.xlu1 %1978  ;;  %v4034_v46 = vld [vmem:[#allocation21_spill] sm:$0xff]  ;;  %v3402_v13 = vld [vmem:[%s2579_s21 + $0xa8] sm:$0xff] }
  0xc3   : > { %v3370_v57 = vsel %vm1308_vm2, %v1296_v28, %v1965_v32  ;;  %v3373_v30 = vsel %vm1308_vm2, %v1297_v2, %v1966_v58  ;;  %v2292_v58 = vpack.i.bf16 %v3405_v50, %v3402_v13 }
  0xc4   : > { %v3375_v15 = vpop.permute.xlu0 %1973  ;;  %2268 = vrot.lane.b32.xlu1 %v3058_v56, %s2535_s29 }
  0xc6   : > { %2263 = vrot.lane.b32.xlu0 %v2954_v20, %s2535_s29  ;;  %v3381_v45 = vpop.permute.xlu1 %1988 }
  0xc8   : > { %v3383_v49 = vpop.permute.xlu0 %1983  ;;  %2278 = vrot.lane.b32.xlu1 %v4034_v46, %s2531_s25 }
  0xca   : > { %2273 = vrot.lane.b32.xlu0 %v4035_v18, %s2531_s25  ;;  %v1999_v25 = vpop.permute.xlu1 %1998 }
  0xcb   : > { %v2001_v59 = vunpack.i.h.bf16 %v1999_v25  ;;  %v2000_v54 = vunpack.i.l.bf16 %v1999_v25 }
  0xcc   : > { %v1994_v56 = vpop.permute.xlu0 %1993  ;;  %2288 = vrot.lane.b32.xlu1 %v4036_v35, %s2532_s26 }
  0xcd   : > { %v3393_v20 = vsel %vm1341_vm4, %v3258_v23, %v2000_v54  ;;  %v3397_v40 = vsel %vm1341_vm4, %v3261_v8, %v2001_v59  ;;  %v1996_v62 = vunpack.i.h.bf16 %v1994_v56  ;;  %v1995_v29 = vunpack.i.l.bf16 %v1994_v56 }
  0xce   : > { %4037 = vst [vmem:[#allocation20_spill] sm:$0xff] %v3393_v20  ;;  %4038 = vst [vmem:[#allocation15_spill] sm:$0xff] %v3397_v40  ;;  %2283 = vrot.lane.b32.xlu0 %v4039_v19, %s2532_s26  ;;  %v2009_v14 = vpop.permute.xlu1 %2008  ;;  %v1991_v40 = vunpack.i.h.bf16 %v3381_v45  ;;  %v1990_v20 = vunpack.i.l.bf16 %v3381_v45 }
  0xcf   : > { %v3411_v23 = vsel %vm1341_vm4, %v3272_v51, %v1995_v29  ;;  %v3415_v8 = vsel %vm1341_vm4, %v3275_v34, %v1996_v62  ;;  %v2011_v32 = vunpack.i.h.bf16 %v2009_v14  ;;  %v2010_v2 = vunpack.i.l.bf16 %v2009_v14 }
  0xd0   : > { %4040 = vst [vmem:[#allocation19_spill] sm:$0xff] %v3411_v23  ;;  %4041 = vst [vmem:[#allocation12_spill] sm:$0xff] %v3415_v8  ;;  %v2004_v28 = vpop.permute.xlu0 %2003  ;;  %2298 = vrot.lane.b32.xlu1 %v3119_v47, %s2533_s27  ;;  %v3527_v23 = vld [vmem:[%s2579_s21 + $0x140] sm:$0xff] }
  0xd1   : > { %v3421_v25 = vsel %vm1341_vm4, %v3287_v52, %v2010_v2  ;;  %v3425_v59 = vsel %vm1341_vm4, %v3284_v31, %v2011_v32  ;;  %v2006_v51 = vunpack.i.h.bf16 %v2004_v28  ;;  %v2005_v54 = vunpack.i.l.bf16 %v2004_v28 }
  0xd2   : > { %4042 = vst [vmem:[#allocation7_spill] sm:$0xff] %v3421_v25  ;;  %4043 = vst [vmem:[#allocation6_spill] sm:$0xff] %v3425_v59  ;;  %2293 = vrot.lane.b32.xlu0 %v2292_v58, %s2533_s27  ;;  %v3428_v34 = vpop.permute.xlu1 %2018  ;;  %v4047_v58 = vld [vmem:[#allocation22_spill] sm:$0xff]  ;;  %v2480_v25 = vld [vmem:[%s2579_s21 + $0x170] sm:$0xff] }
  0xd3   : > { %v3432_v56 = vsel %vm1341_vm4, %v3301_v42, %v2005_v54  ;;  %v3436_v47 = vsel %vm1341_vm4, %v3298_v16, %v2006_v51  ;;  %v2481_v59 = vld [vmem:[%s2579_s21 + $0x168] sm:$0xff] }
  0xd4   : > { %4044 = vst [vmem:[#allocation5_spill] sm:$0xff] %v3432_v56  ;;  %4045 = vst [vmem:[#allocation24_spill] sm:$0xff] %v3436_v47  ;;  %v3438_v52 = vpop.permute.xlu0 %2013  ;;  %2308 = vrot.lane.b32.xlu1 %v2864_v17, %s2534_s28 }
  0xd5   : > { %4046 = vst [vmem:[#allocation13_spill] sm:$0xff] %v3438_v52 }
  0xd6   : > { %2303 = vrot.lane.b32.xlu0 %v4025_v37, %s2534_s28  ;;  %v3444_v31 = vpop.permute.xlu1 %2028 }
  0xd8   : > { %v3446_v62 = vpop.permute.xlu0 %2023  ;;  %2318 = vrot.lane.b32.xlu1 %v3028_v55, %s2535_s29 }
  0xda   : > { %2313 = vrot.lane.b32.xlu0 %v2927_v33, %s2535_s29  ;;  %v2039_v16 = vpop.permute.xlu1 %2038  ;;  %v4050_v33 = vld [vmem:[#allocation11_spill] sm:$0xff] }
  0xdb   : > { %v2041_v42 = vunpack.i.h.bf16 %v2039_v16  ;;  %v2040_v29 = vunpack.i.l.bf16 %v2039_v16  ;;  %v4053_v16 = vld [vmem:[#allocation16_spill] sm:$0xff] }
  0xdc   : > { %v2034_v14 = vpop.permute.xlu0 %2033  ;;  %2328 = vrot.lane.b32.xlu1 %v4047_v58, %s2531_s25 }
  0xdd   : > { %v3456_v17 = vsel %vm1341_vm4, %v3333_v12, %v2040_v29  ;;  %v3460_v37 = vsel %vm1341_vm4, %v3330_v63, %v2041_v42  ;;  %v2036_v32 = vunpack.i.h.bf16 %v2034_v14  ;;  %v2035_v55 = vunpack.i.l.bf16 %v2034_v14 }
  0xde   : > { %4048 = vst [vmem:[#allocation17_spill] sm:$0xff] %v3456_v17  ;;  %4049 = vst [vmem:[#allocation28_spill] sm:$0xff] %v3460_v37  ;;  %2323 = vrot.lane.b32.xlu0 %v4050_v33, %s2531_s25  ;;  %v2049_v2 = vpop.permute.xlu1 %2048  ;;  %v2031_v37 = vunpack.i.h.bf16 %v3444_v31  ;;  %v2030_v17 = vunpack.i.l.bf16 %v3444_v31 }
  0xdf   : > { %v3466_v28 = vsel %vm1341_vm4, %v3344_v3, %v2035_v55  ;;  %v3470_v12 = vsel %vm1341_vm4, %v3347_v41, %v2036_v32  ;;  %v2051_v51 = vunpack.i.h.bf16 %v2049_v2  ;;  %v2050_v54 = vunpack.i.l.bf16 %v2049_v2  ;;  %v4056_v55 = vld [vmem:[#allocation27_spill] sm:$0xff]  ;;  %v3490_v2 = vld [vmem:[%s2579_s21 + $0x98] sm:$0xff] }
  0xe0   : > { %4051 = vst [vmem:[#allocation21_spill] sm:$0xff] %v3466_v28  ;;  %4052 = vst [vmem:[#allocation10_spill] sm:$0xff] %v3470_v12  ;;  %v2044_v63 = vpop.permute.xlu0 %2043  ;;  %2338 = vrot.lane.b32.xlu1 %v4053_v16, %s2532_s26  ;;  %v3487_v32 = vld [vmem:[%s2579_s21 + $0x90] sm:$0xff]  ;;  %v3532_v12 = vld [vmem:[%s2579_s21 + $0x78] sm:$0xff]  ;;  %v1951_v28 = vunpack.i.h.bf16 %v3309_v0 }
  0xe1   : > { %v3476_v42 = vsel %vm1341_vm4, %v3359_v43, %v2050_v54  ;;  %v3480_v29 = vsel %vm1341_vm4, %v3356_v24, %v2051_v51  ;;  %v2046_v3 = vunpack.i.h.bf16 %v2044_v63  ;;  %v2045_v14 = vunpack.i.l.bf16 %v2044_v63 }
  0xe2   : > { %4054 = vst [vmem:[#allocation14_spill] sm:$0xff] %v3476_v42  ;;  %4055 = vst [vmem:[#allocation26_spill] sm:$0xff] %v3480_v29  ;;  %2333 = vrot.lane.b32.xlu0 %v4056_v55, %s2532_s26  ;;  %v3484_v41 = vpop.permute.xlu1 %2058  ;;  %v2342_v8 = vpack.i.bf16 %v3490_v2, %v3487_v32 }
  0xe3   : > { %v3496_v43 = vsel %vm1341_vm4, %v3370_v57, %v2045_v14  ;;  %v3500_v24 = vsel %vm1341_vm4, %v3373_v30, %v2046_v3  ;;  %v1910_v3 = vunpack.i.l.bf16 %v3241_v7  ;;  %v3524_v14 = vld [vmem:[%s2579_s21 + $0x138] sm:$0xff] }
  0xe4   : > { %4057 = vst [vmem:[#allocation22_spill] sm:$0xff] %v3496_v43  ;;  %4058 = vst [vmem:[#allocation11_spill] sm:$0xff] %v3500_v24  ;;  %v3502_v51 = vpop.permute.xlu0 %2053  ;;  %2348 = vrot.lane.b32.xlu1 %v3124_v48, %s2533_s27  ;;  %v1871_v48 = vunpack.i.h.bf16 %v3208_v36 }
  0xe5   : > { %4059 = vst [vmem:[#allocation16_spill] sm:$0xff] %v3502_v51  ;;  %v1306_v29 = vsel %vm1275_vm3, %v2481_v59, %v1910_v3  ;;  %v4060_v51 = vld [vmem:[#allocation9_spill] sm:$0xff] }
  0xe6   : > { %2343 = vrot.lane.b32.xlu0 %v2342_v8, %s2533_s27  ;;  %v2069_v54 = vpop.permute.xlu1 %2068  ;;  %v1870_v8 = vunpack.i.l.bf16 %v3208_v36  ;;  %v3535_v36 = vld [vmem:[%s2579_s21 + $0x80] sm:$0xff]  ;;  %v1291_v56 = vsel %vm1275_vm3, %v3405_v50, %v1871_v48 }
  0xe7   : > { %v2071_v24 = vunpack.i.h.bf16 %v2069_v54  ;;  %v2070_v43 = vunpack.i.l.bf16 %v2069_v54  ;;  %v1324_v52 = vsel %vm1308_vm2, %v1291_v56, %v1951_v28  ;;  %v1339_v54 = vsel %vm1308_vm2, %v1306_v29, %v1990_v20 }
  0xe8   : > { %v2064_v63 = vpop.permute.xlu0 %2063  ;;  %2358 = vrot.lane.b32.xlu1 %v4030_v60, %s2534_s28  ;;  %v1911_v60 = vunpack.i.h.bf16 %v3241_v7  ;;  %v2392_v7 = vpack.i.bf16 %v3535_v36, %v3532_v12 }
  0xe9   : > { %v2066_v31 = vunpack.i.h.bf16 %v2064_v63  ;;  %v2065_v42 = vunpack.i.l.bf16 %v2064_v63 }
  0xea   : > { %2353 = vrot.lane.b32.xlu0 %v4031_v1, %s2534_s28  ;;  %v3511_v57 = vpop.permute.xlu1 %2078  ;;  %v1307_v45 = vsel %vm1275_vm3, %v2480_v25, %v1911_v60  ;;  %v1357_v25 = vsel %vm1341_vm4, %v1324_v52, %v2031_v37  ;;  %v4061_v37 = vld [vmem:[#allocation23_spill] sm:$0xff] }
  0xeb   : > { %v2081_v59 = vunpack.i.h.bf16 %v3511_v57  ;;  %v2080_v63 = vunpack.i.l.bf16 %v3511_v57  ;;  %v1390_v28 = vsel %vm1374_vm5, %v1357_v25, %v2071_v24 }
  0xec   : > { %v3513_v30 = vpop.permute.xlu0 %2073  ;;  %2368 = vrot.lane.b32.xlu1 %v4032_v21, %s2535_s29  ;;  %v2397_v21 = vpack.i.bf16 %v3527_v23, %v3524_v14 }
  0xed   : > { %v2076_v60 = vunpack.i.h.bf16 %v3513_v30 }
  0xee   : > { %2363 = vrot.lane.b32.xlu0 %v4033_v44, %s2535_s29  ;;  %v2089_v1 = vpop.permute.xlu1 %2088  ;;  %v1950_v44 = vunpack.i.l.bf16 %v3309_v0  ;;  %v1290_v0 = vsel %vm1275_vm3, %v3402_v13, %v1870_v8  ;;  %v1340_v13 = vsel %vm1308_vm2, %v1307_v45, %v1991_v40 }
  0xef   : > { %v2090_v40 = vunpack.i.l.bf16 %v2089_v1  ;;  %v1373_v20 = vsel %vm1341_vm4, %v1340_v13, %v2066_v31 }
  0xf0   : > { %v2084_v47 = vpop.permute.xlu0 %2083  ;;  %2378 = vrot.lane.b32.xlu1 %v2820_v61, %s2531_s25  ;;  %v1323_v50 = vsel %vm1308_vm2, %v1290_v0, %v1950_v44 }
  0xf1   : > { %v1356_v48 = vsel %vm1341_vm4, %v1323_v50, %v2030_v17  ;;  %v1372_v17 = vsel %vm1341_vm4, %v1339_v54, %v2065_v42  ;;  %v2086_v44 = vunpack.i.h.bf16 %v2084_v47  ;;  %v2085_v0 = vunpack.i.l.bf16 %v2084_v47 }
  0xf2   : > { %2373 = vrot.lane.b32.xlu0 %v4060_v51, %s2531_s25  ;;  %v2099_v61 = vpop.permute.xlu1 %2098  ;;  %v1389_v56 = vsel %vm1374_vm5, %v1356_v48, %v2070_v43  ;;  %v2091_v51 = vunpack.i.h.bf16 %v2089_v1  ;;  %v1423_v1 = vsel %vm1407_vm6, %v1390_v28, %v2081_v59 }
  0xf3   : > { %v2101_v29 = vunpack.i.h.bf16 %v2099_v61  ;;  %v2100_v52 = vunpack.i.l.bf16 %v2099_v61  ;;  %v1422_v24 = vsel %vm1407_vm6, %v1389_v56, %v2080_v63 }
  0xf4   : > { %v2094_v8 = vpop.permute.xlu0 %2093  ;;  %2388 = vrot.lane.b32.xlu1 %v2959_v22, %s2532_s26  ;;  %v2075_v22 = vunpack.i.l.bf16 %v3513_v30  ;;  %v1455_v42 = vsel %vm1440_vm7, %v1422_v24, %v2090_v40  ;;  %v1456_v31 = vsel %vm1440_vm7, %v1423_v1, %v2091_v51  ;;  %v1905_v24 = vunpack.i.l.bf16 %v3243_v5 }
  0xf5   : > { %v2096_v61 = vunpack.i.h.bf16 %v2094_v8  ;;  %v2095_v50 = vunpack.i.l.bf16 %v2094_v8  ;;  %v1488_v48 = vsel %vm1473_vm8, %v1455_v42, %v2100_v52  ;;  %v1489_v25 = vsel %vm1473_vm8, %v1456_v31, %v2101_v29  ;;  %v3630_v31 = vld [vmem:[%s2579_s21 + $0x68] sm:$0xff] }
  0xf6   : > { %2383 = vrot.lane.b32.xlu0 %v4061_v37, %s2532_s26  ;;  %v2109_v57 = vpop.permute.xlu1 %2108  ;;  %v1405_v47 = vsel %vm1374_vm5, %v1372_v17, %v2075_v22  ;;  %v1866_v22 = vunpack.i.h.bf16 %v3210_v10  ;;  %v1945_v1 = vunpack.i.l.bf16 %v3313_v53  ;;  %v1985_v42 = vunpack.i.l.bf16 %v3383_v49 }
  0xf7   : > { %v2111_v3 = vunpack.i.h.bf16 %v2109_v57  ;;  %v2110_v43 = vunpack.i.l.bf16 %v2109_v57  ;;  %v1438_v8 = vsel %vm1407_vm6, %v1405_v47, %v2085_v0  ;;  %v3617_v0 = vld [vmem:[%s2579_s21 + $0x120] sm:$0xff]  ;;  %v2486_v47 = vld [vmem:[%s2579_s21 + $0x158] sm:$0xff] }
  0xf8   : > { %v2104_v45 = vpop.permute.xlu0 %2103  ;;  %2398 = vrot.lane.b32.xlu1 %v2397_v21, %s2533_s27  ;;  %v1406_v21 = vsel %vm1374_vm5, %v1373_v20, %v2076_v60 }
  0xf9   : > { %v2106_v13 = vunpack.i.h.bf16 %v2104_v45  ;;  %v2105_v54 = vunpack.i.l.bf16 %v2104_v45  ;;  %v1521_v59 = vsel %vm1506_vm9, %v1488_v48, %v2110_v43  ;;  %v1522_v63 = vsel %vm1506_vm9, %v1489_v25, %v2111_v3  ;;  %v3620_v45 = vld [vmem:[%s2579_s21 + $0x128] sm:$0xff] }
  0xfa   : > { %2393 = vrot.lane.b32.xlu0 %v2392_v7, %s2533_s27  ;;  %v3581_v30 = vpop.permute.xlu1 %2118  ;;  %v1439_v56 = vsel %vm1407_vm6, %v1406_v21, %v2086_v44  ;;  %v1471_v7 = vsel %vm1440_vm7, %v1438_v8, %v2095_v50  ;;  %v1546_v37 = vpack.c.bf16 %v1522_v63, %v1521_v59  ;;  %v1865_v3 = vunpack.i.l.bf16 %v3210_v10  ;;  %v2487_v59 = vld [vmem:[%s2579_s21 + $0x150] sm:$0xff] }
  0xfb   : > { %v1472_v51 = vsel %vm1440_vm7, %v1439_v56, %v2096_v61  ;;  %v1504_v29 = vsel %vm1473_vm8, %v1471_v7, %v2105_v54  ;;  %v1906_v43 = vunpack.i.h.bf16 %v3243_v5  ;;  %v2447_v10 = vpack.i.bf16 %v3620_v45, %v3617_v0 }
  0xfc   : > { %v2114_v28 = vpop.permute.xlu0 %2113  ;;  %2408 = vrot.lane.b32.xlu1 %v4034_v46, %s2534_s28  ;;  %v1505_v52 = vsel %vm1473_vm8, %v1472_v51, %v2106_v13  ;;  %v1946_v5 = vunpack.i.h.bf16 %v3313_v53  ;;  %v1986_v50 = vunpack.i.h.bf16 %v3383_v49  ;;  %v2026_v13 = vunpack.i.h.bf16 %v3446_v62 }
  0xfd   : > { %v2116_v40 = vunpack.i.h.bf16 %v2114_v28  ;;  %v2115_v17 = vunpack.i.l.bf16 %v2114_v28  ;;  %v2025_v54 = vunpack.i.l.bf16 %v3446_v62  ;;  %v1289_v53 = vsel %vm1275_vm3, %v3490_v2, %v1866_v22 }
  0xfe   : > { %2403 = vrot.lane.b32.xlu0 %v4035_v18, %s2534_s28  ;;  %v3597_v20 = vpop.permute.xlu1 %2128  ;;  %v1288_v25 = vsel %vm1275_vm3, %v3487_v32, %v1865_v3  ;;  %v1305_v21 = vsel %vm1275_vm3, %v2486_v47, %v1906_v43  ;;  %v1304_v49 = vsel %vm1275_vm3, %v2487_v59, %v1905_v24  ;;  %v2121_v62 = vunpack.i.h.bf16 %v3581_v30  ;;  %v4063_v43 = vld [vmem:[#allocation25_spill] sm:$0xff] }
  0xff   : > { %v1537_v57 = vsel %vm1506_vm9, %v1504_v29, %v2115_v17  ;;  %v1538_v46 = vsel %vm1506_vm9, %v1505_v52, %v2116_v40  ;;  %v1321_v63 = vsel %vm1308_vm2, %v1288_v25, %v1945_v1  ;;  %v2120_v8 = vunpack.i.l.bf16 %v3581_v30 }
 0x100   : > { %v3603_v60 = vpop.permute.xlu0 %2123  ;;  %2418 = vrot.lane.b32.xlu1 %v4036_v35, %s2535_s29  ;;  %v1554_v18 = vpack.c.bf16 %v1538_v46, %v1537_v57  ;;  %v1582_v35 = vsel %vm1556_vm10, %v1546_v37, 0  ;;  %v1322_v2 = vsel %vm1308_vm2, %v1289_v53, %v1946_v5  ;;  %v1337_v32 = vsel %vm1308_vm2, %v1304_v49, %v1985_v42 }
 0x101   : > { %v2131_v28 = vunpack.i.h.bf16 %v3597_v20  ;;  %v2130_v7 = vunpack.i.l.bf16 %v3597_v20  ;;  %v1338_v51 = vsel %vm1308_vm2, %v1305_v21, %v1986_v50  ;;  %v1354_v40 = vsel %vm1341_vm4, %v1321_v63, %v2025_v54 }
 0x102   : > { %2413 = vrot.lane.b32.xlu0 %v4039_v19, %s2535_s29  ;;  %1798 = vmatprep.subr.msk.bf16.mxu0 %vm1556_vm10, %v1554_v18  ;;  %v2139_v44 = vpop.permute.xlu1 %2138  ;;  %v3627_v19 = vld [vmem:[%s2579_s21 + $0x60] sm:$0xff]  ;;  %v1355_v17 = vsel %vm1341_vm4, %v1322_v2, %v2026_v13  ;;  %v2125_v30 = vunpack.i.l.bf16 %v3603_v60  ;;  %v2126_v52 = vunpack.i.h.bf16 %v3603_v60  ;;  %v1370_v18 = vsel %vm1341_vm4, %v1337_v32, %v2120_v8 }
 0x103   : > { %1781 = vmatpush3.bf16.xpose.msra.mxu0 %v1582_v35  ;;  %v2442_v61 = vpack.i.bf16 %v3630_v31, %v3627_v19  ;;  %v2141_v37 = vunpack.i.h.bf16 %v2139_v44  ;;  %v2140_v57 = vunpack.i.l.bf16 %v2139_v44  ;;  %v1371_v20 = vsel %vm1341_vm4, %v1338_v51, %v2121_v62 }
 0x104   : > { %v2134_v48 = vpop.permute.xlu0 %2133  ;;  %2428 = vrot.lane.b32.xlu1 %v2832_v26, %s2531_s25  ;;  %v4062_v26 = vld [vmem:[#allocation8_spill] sm:$0xff]  ;;  %v1403_v1 = vsel %vm1374_vm5, %v1370_v18, %v2130_v7  ;;  %v1404_v35 = vsel %vm1374_vm5, %v1371_v20, %v2131_v28  ;;  %v1387_v60 = vsel %vm1374_vm5, %v1354_v40, %v2125_v30  ;;  %v1388_v54 = vsel %vm1374_vm5, %v1355_v17, %v2126_v52 }
 0x105   : > { %v2135_v46 = vunpack.i.l.bf16 %v2134_v48  ;;  %v2136_v22 = vunpack.i.h.bf16 %v2134_v48  ;;  %v1436_v48 = vsel %vm1407_vm6, %v1403_v1, %v2140_v57  ;;  %v1437_v53 = vsel %vm1407_vm6, %v1404_v35, %v2141_v37 }
 0x106   : > { %2423 = vrot.lane.b32.xlu0 %v4062_v26, %s2531_s25  ;;  %v2149_v56 = vpop.permute.xlu1 %2148  ;;  %v1861_v20 = vunpack.i.h.bf16 %v3201_v9  ;;  %v1941_v1 = vunpack.i.h.bf16 %v3295_v11  ;;  %v1981_v35 = vunpack.i.h.bf16 %v3367_v27 }
 0x107   : > { %v2150_v3 = vunpack.i.l.bf16 %v2149_v56  ;;  %v1420_v25 = vsel %vm1407_vm6, %v1387_v60, %v2135_v46  ;;  %v1421_v47 = vsel %vm1407_vm6, %v1388_v54, %v2136_v22  ;;  %v1860_v22 = vunpack.i.l.bf16 %v3201_v9 }
 0x108   : > { %v2144_v29 = vpop.permute.xlu0 %2143  ;;  %2438 = vrot.lane.b32.xlu1 %v2963_v4, %s2532_s26  ;;  %v2151_v4 = vunpack.i.h.bf16 %v2149_v56  ;;  %v3683_v56 = vld [vmem:[%s3937_s1] sm:$0xf]  ;;  %v2021_v9 = vunpack.i.h.bf16 %v3428_v34 }
 0x109   : > { %v2145_v5 = vunpack.i.l.bf16 %v2144_v29  ;;  %v2146_v44 = vunpack.i.h.bf16 %v2144_v29  ;;  %v1469_v21 = vsel %vm1440_vm7, %v1436_v48, %v2150_v3  ;;  %1796 = vmatprep.mubr.msk.bf16.mxu0 %vm1556_vm10, %v3683_v56  ;;  %v1901_v3 = vunpack.i.h.bf16 %v3233_v39 }
 0x10a   : > { %2433 = vrot.lane.b32.xlu0 %v4063_v43, %s2532_s26  ;;  %v2159_v24 = vpop.permute.xlu1 %2158  ;;  %v1470_v62 = vsel %vm1440_vm7, %v1437_v53, %v2151_v4  ;;  %v1980_v4 = vunpack.i.l.bf16 %v3367_v27  ;;  %v1286_v60 = vsel %vm1275_vm3, %v3532_v12, %v1860_v22  ;;  %v2060_v27 = vunpack.i.l.bf16 %v3484_v41 }
 0x10b   : > { %v2161_v42 = vunpack.i.h.bf16 %v2159_v24  ;;  %v2160_v50 = vunpack.i.l.bf16 %v2159_v24  ;;  %v1454_v2 = vsel %vm1440_vm7, %v1421_v47, %v2146_v44  ;;  %v1303_v44 = vsel %vm1275_vm3, %v3527_v23, %v1901_v3 }
 0x10c   : > { %v2154_v13 = vpop.permute.xlu0 %2153  ;;  %2448 = vrot.lane.b32.xlu1 %v2447_v10, %s2533_s27  ;;  %v1453_v10 = vsel %vm1440_vm7, %v1420_v25, %v2145_v5  ;;  %v2020_v5 = vunpack.i.l.bf16 %v3428_v34  ;;  %v1336_v48 = vsel %vm1308_vm2, %v1303_v44, %v1981_v35 }
 0x10d   : > { %v2156_v59 = vunpack.i.h.bf16 %v2154_v13  ;;  %v2155_v49 = vunpack.i.l.bf16 %v2154_v13  ;;  %v1502_v32 = vsel %vm1473_vm8, %v1469_v21, %v2160_v50  ;;  %v1503_v28 = vsel %vm1473_vm8, %v1470_v62, %v2161_v42 }
 0x10e   : > { %2443 = vrot.lane.b32.xlu0 %v2442_v61, %s2533_s27  ;;  %v2169_v63 = vpop.permute.xlu1 %2168  ;;  %v2061_v42 = vunpack.i.h.bf16 %v3484_v41 }
 0x10f   : > { %v2171_v8 = vunpack.i.h.bf16 %v2169_v63  ;;  %v2170_v26 = vunpack.i.l.bf16 %v2169_v63  ;;  %v1486_v30 = vsel %vm1473_vm8, %v1453_v10, %v2155_v49  ;;  %v1487_v29 = vsel %vm1473_vm8, %v1454_v2, %v2156_v59 }
 0x110   : > { %v2164_v7 = vpop.permute.xlu0 %2163  ;;  %2458 = vrot.lane.b32.xlu1 %v4047_v58, %s2534_s28  ;;  %v1369_v49 = vsel %vm1341_vm4, %v1336_v48, %v2061_v42  ;;  %v1895_v48 = vunpack.i.l.bf16 %v3235_v6 }
 0x111   : > { %v1535_v61 = vsel %vm1506_vm9, %v1502_v32, %v2170_v26  ;;  %v1536_v51 = vsel %vm1506_vm9, %v1503_v28, %v2171_v8  ;;  %v2166_v40 = vunpack.i.h.bf16 %v2164_v7  ;;  %v2165_v17 = vunpack.i.l.bf16 %v2164_v7 }
 0x112   : > { %v1553_v52 = vpack.c.bf16 %v1536_v51, %v1535_v61  ;;  %2453 = vrot.lane.b32.xlu0 %v4050_v33, %s2534_s28  ;;  %v2179_v37 = vpop.permute.xlu1 %2178  ;;  %v1900_v33 = vunpack.i.l.bf16 %v3233_v39 }
 0x113   : > { %v1519_v58 = vsel %vm1506_vm9, %v1486_v30, %v2165_v17  ;;  %v1520_v57 = vsel %vm1506_vm9, %v1487_v29, %v2166_v40  ;;  %v2181_v54 = vunpack.i.h.bf16 %v2179_v37 }
 0x114   : > { %v2174_v46 = vpop.permute.xlu0 %2173  ;;  %2468 = vrot.lane.b32.xlu1 %v4053_v16, %s2535_s29  ;;  %1799 = vmatprep.subr.msk.bf16.mxu0 %vm1556_vm10, %v1553_v52  ;;  %v1545_v18 = vpack.c.bf16 %v1520_v57, %v1519_v58  ;;  %v1940_v16 = vunpack.i.l.bf16 %v3295_v11  ;;  %v1302_v11 = vsel %vm1275_vm3, %v3524_v14, %v1900_v33 }
 0x115   : > { %v1335_v12 = vsel %vm1308_vm2, %v1302_v11, %v1980_v4  ;;  %v2176_v25 = vunpack.i.h.bf16 %v2174_v46  ;;  %v2175_v47 = vunpack.i.l.bf16 %v2174_v46  ;;  %v1402_v26 = vsel %vm1374_vm5, %v1369_v49, %v2181_v54 }
 0x116   : > { %2463 = vrot.lane.b32.xlu0 %v4056_v55, %s2535_s29  ;;  %v1579_v43 = vsel %vm1556_vm10, %v1545_v18, 0  ;;  %v2189_v24 = vpop.permute.xlu1 %2188  ;;  %v1287_v55 = vsel %vm1275_vm3, %v3535_v36, %v1861_v20  ;;  %v1319_v13 = vsel %vm1308_vm2, %v1286_v60, %v1940_v16  ;;  %v2180_v36 = vunpack.i.l.bf16 %v2179_v37 }
 0x117   : > { %1783 = vmatpush3.bf16.xpose.msra.mxu0 %v1579_v43  ;;  %v1320_v34 = vsel %vm1308_vm2, %v1287_v55, %v1941_v1  ;;  %v1352_v23 = vsel %vm1341_vm4, %v1319_v13, %v2020_v5  ;;  %v2191_v21 = vunpack.i.h.bf16 %v2189_v24  ;;  %v2190_v41 = vunpack.i.l.bf16 %v2189_v24 }
 0x118   : > { %v2184_v39 = vpop.permute.xlu0 %2183  ;;  %v1353_v53 = vsel %vm1341_vm4, %v1320_v34, %v2021_v9  ;;  %v1368_v59 = vsel %vm1341_vm4, %v1335_v12, %v2060_v27  ;;  %v1385_v30 = vsel %vm1374_vm5, %v1352_v23, %v2175_v47  ;;  %v1856_v13 = vunpack.i.h.bf16 %v3203_v38 }
 0x119   : > { %v2186_v63 = vunpack.i.h.bf16 %v2184_v39  ;;  %v2185_v62 = vunpack.i.l.bf16 %v2184_v39  ;;  %v1401_v8 = vsel %vm1374_vm5, %v1368_v59, %v2180_v36  ;;  %v1386_v17 = vsel %vm1374_vm5, %v1353_v53, %v2176_v25  ;;  %v4064_v53 = vld [vmem:[#allocation18_spill] sm:$0xff] }
 0x11a   : > { %v2199_v50 = vpop.permute.xlu1 %2198  ;;  %v1434_v29 = vsel %vm1407_vm6, %v1401_v8, %v2190_v41  ;;  %v1435_v52 = vsel %vm1407_vm6, %v1402_v26, %v2191_v21  ;;  %v1855_v54 = vunpack.i.l.bf16 %v3203_v38  ;;  %v1896_v36 = vunpack.i.h.bf16 %v3235_v6  ;;  %v4065_v41 = vld [vmem:[#allocation13_spill] sm:$0xff]  ;;  %v4066_v8 = vld [vmem:[#allocation16_spill] sm:$0xff] }
 0x11b   : > { %v2201_v2 = vunpack.i.h.bf16 %v2199_v50  ;;  %v2200_v32 = vunpack.i.l.bf16 %v2199_v50  ;;  %v1418_v37 = vsel %vm1407_vm6, %v1385_v30, %v2185_v62  ;;  %v1419_v58 = vsel %vm1407_vm6, %v1386_v17, %v2186_v63 }
 0x11c   : > { %v2194_v14 = vpop.permute.xlu0 %2193  ;;  %v1935_v25 = vunpack.i.l.bf16 %v4064_v53  ;;  %v1976_v47 = vunpack.i.h.bf16 %v3375_v15  ;;  %v1975_v21 = vunpack.i.l.bf16 %v3375_v15  ;;  %v2016_v59 = vunpack.i.h.bf16 %v4065_v41 }
 0x11d   : > { %v2196_v28 = vunpack.i.h.bf16 %v2194_v14  ;;  %v2195_v7 = vunpack.i.l.bf16 %v2194_v14  ;;  %v1467_v20 = vsel %vm1440_vm7, %v1434_v29, %v2200_v32  ;;  %v1468_v22 = vsel %vm1440_vm7, %v1435_v52, %v2201_v2 }
 0x11e   : > { %v2209_v10 = vpop.permute.xlu1 %2208  ;;  %v1936_v14 = vunpack.i.h.bf16 %v4064_v53  ;;  %v2015_v38 = vunpack.i.l.bf16 %v4065_v41  ;;  %v1285_v6 = vsel %vm1275_vm3, %v3630_v31, %v1856_v13  ;;  %v1284_v63 = vsel %vm1275_vm3, %v3627_v19, %v1855_v54 }
 0x11f   : > { %v2211_v61 = vunpack.i.h.bf16 %v2209_v10  ;;  %v2210_v51 = vunpack.i.l.bf16 %v2209_v10  ;;  %v1451_v43 = vsel %vm1440_vm7, %v1418_v37, %v2195_v7  ;;  %v1452_v24 = vsel %vm1440_vm7, %v1419_v58, %v2196_v28 }
 0x120   : > { %v2204_v40 = vpop.permute.xlu0 %2203  ;;  %v1301_v62 = vsel %vm1275_vm3, %v3620_v45, %v1896_v36  ;;  %v1300_v10 = vsel %vm1275_vm3, %v3617_v0, %v1895_v48  ;;  %v2056_v26 = vunpack.i.h.bf16 %v4066_v8  ;;  %v2055_v15 = vunpack.i.l.bf16 %v4066_v8 }
 0x121   : > { %v2206_v57 = vunpack.i.h.bf16 %v2204_v40  ;;  %v2205_v46 = vunpack.i.l.bf16 %v2204_v40  ;;  %v1500_v1 = vsel %vm1473_vm8, %v1467_v20, %v2210_v51  ;;  %v1501_v16 = vsel %vm1473_vm8, %v1468_v22, %v2211_v61 }
 0x122   : > { %v2219_v18 = vpop.permute.xlu1 %2218  ;;  %v1317_v32 = vsel %vm1308_vm2, %v1284_v63, %v1935_v25  ;;  %v1318_v28 = vsel %vm1308_vm2, %v1285_v6, %v1936_v14  ;;  %v1333_v61 = vsel %vm1308_vm2, %v1300_v10, %v1975_v21  ;;  %v1334_v19 = vsel %vm1308_vm2, %v1301_v62, %v1976_v47 }
 0x123   : > { %v2221_v3 = vunpack.i.h.bf16 %v2219_v18  ;;  %v2220_v33 = vunpack.i.l.bf16 %v2219_v18  ;;  %v1484_v55 = vsel %vm1473_vm8, %v1451_v43, %v2205_v46  ;;  %v1485_v60 = vsel %vm1473_vm8, %v1452_v24, %v2206_v57 }
 0x124   : > { %v2214_v35 = vpop.permute.xlu0 %2213  ;;  %v1350_v45 = vsel %vm1341_vm4, %v1317_v32, %v2015_v38  ;;  %v1351_v51 = vsel %vm1341_vm4, %v1318_v28, %v2016_v59  ;;  %v1366_v52 = vsel %vm1341_vm4, %v1333_v61, %v2055_v15  ;;  %v1367_v37 = vsel %vm1341_vm4, %v1334_v19, %v2056_v26 }
 0x125   : > { %v1533_v4 = vsel %vm1506_vm9, %v1500_v1, %v2220_v33  ;;  %v1534_v9 = vsel %vm1506_vm9, %v1501_v16, %v2221_v3  ;;  %v2216_v5 = vunpack.i.h.bf16 %v2214_v35  ;;  %v2215_v39 = vunpack.i.l.bf16 %v2214_v35 }
 0x126   : > { %v1552_v44 = vpack.c.bf16 %v1534_v9, %v1533_v4  ;;  %v2229_v11 = vpop.permute.xlu1 %2228 }
 0x127   : > { %v1517_v42 = vsel %vm1506_vm9, %v1484_v55, %v2215_v39  ;;  %v1518_v27 = vsel %vm1506_vm9, %v1485_v60, %v2216_v5  ;;  %v2231_v7 = vunpack.i.h.bf16 %v2229_v11  ;;  %v2230_v31 = vunpack.i.l.bf16 %v2229_v11 }
 0x128   : > { %v2224_v50 = vpop.permute.xlu0 %2223  ;;  %1800 = vmatprep.subr.msk.bf16.mxu0 %vm1556_vm10, %v1552_v44  ;;  %v1544_v34 = vpack.c.bf16 %v1518_v27, %v1517_v42 }
 0x129   : > { %v2226_v40 = vunpack.i.h.bf16 %v2224_v50  ;;  %v2225_v17 = vunpack.i.l.bf16 %v2224_v50  ;;  %v1399_v18 = vsel %vm1374_vm5, %v1366_v52, %v2230_v31  ;;  %v1400_v20 = vsel %vm1374_vm5, %v1367_v37, %v2231_v7 }
 0x12a   : > { %v1576_v12 = vsel %vm1556_vm10, %v1544_v34, 0  ;;  %v2239_v23 = vpop.permute.xlu1 %2238 }
 0x12b   : > { %1785 = vmatpush3.bf16.xpose.msra.mxu0 %v1576_v12  ;;  %v2241_v30 = vunpack.i.h.bf16 %v2239_v23  ;;  %v2240_v29 = vunpack.i.l.bf16 %v2239_v23  ;;  %v1383_v35 = vsel %vm1374_vm5, %v1350_v45, %v2225_v17  ;;  %v1384_v4 = vsel %vm1374_vm5, %v1351_v51, %v2226_v40  ;;  %v4068_v17 = vld [vmem:[#allocation26_spill] sm:$0xff] }
 0x12c   : > { %v2234_v49 = vpop.permute.xlu0 %2233 }
 0x12d   : > { %v2236_v58 = vunpack.i.h.bf16 %v2234_v49  ;;  %v2235_v57 = vunpack.i.l.bf16 %v2234_v49  ;;  %v1432_v9 = vsel %vm1407_vm6, %v1399_v18, %v2240_v29  ;;  %v1433_v5 = vsel %vm1407_vm6, %v1400_v20, %v2241_v30  ;;  %v4069_v20 = vld [vmem:[#allocation6_spill] sm:$0xff] }
 0x12e   : > { %v2249_v2 = vpop.permute.xlu1 %2248 }
 0x12f   : > { %v2251_v22 = vunpack.i.h.bf16 %v2249_v2  ;;  %v2250_v3 = vunpack.i.l.bf16 %v2249_v2  ;;  %v1416_v39 = vsel %vm1407_vm6, %v1383_v35, %v2235_v57  ;;  %v1417_v55 = vsel %vm1407_vm6, %v1384_v4, %v2236_v58 }
 0x130   : > { %v2244_v0 = vpop.permute.xlu0 %2243 }
 0x131   : > { %v2246_v33 = vunpack.i.h.bf16 %v2244_v0  ;;  %v2245_v43 = vunpack.i.l.bf16 %v2244_v0  ;;  %v1465_v42 = vsel %vm1440_vm7, %v1432_v9, %v2250_v3  ;;  %v1466_v27 = vsel %vm1440_vm7, %v1433_v5, %v2251_v22  ;;  %v4067_v0 = vld [vmem:[#allocation14_spill] sm:$0xff]  ;;  %v4070_v3 = vld [vmem:[#allocation7_spill] sm:$0xff] }
 0x132   : > { %v2259_v46 = vpop.permute.xlu1 %2258 }
 0x133   : > { %v2261_v24 = vunpack.i.h.bf16 %v2259_v46  ;;  %v2260_v1 = vunpack.i.l.bf16 %v2259_v46  ;;  %v1449_v13 = vsel %vm1440_vm7, %v1416_v39, %v2245_v43  ;;  %v1450_v54 = vsel %vm1440_vm7, %v1417_v55, %v2246_v33 }
 0x134   : > { %v2254_v16 = vpop.permute.xlu0 %2253 }
 0x135   : > { %v2256_v60 = vunpack.i.h.bf16 %v2254_v16  ;;  %v2255_v44 = vunpack.i.l.bf16 %v2254_v16  ;;  %v1498_v36 = vsel %vm1473_vm8, %v1465_v42, %v2260_v1  ;;  %v1499_v48 = vsel %vm1473_vm8, %v1466_v27, %v2261_v24 }
 0x136   : > { %v2269_v11 = vpop.permute.xlu1 %2268 }
 0x137   : > { %v2271_v50 = vunpack.i.h.bf16 %v2269_v11  ;;  %v2270_v34 = vunpack.i.l.bf16 %v2269_v11  ;;  %v1482_v47 = vsel %vm1473_vm8, %v1449_v13, %v2255_v44  ;;  %v1483_v21 = vsel %vm1473_vm8, %v1450_v54, %v2256_v60 }
 0x138   : > { %v2264_v12 = vpop.permute.xlu0 %2263 }
 0x139   : > { %v1531_v23 = vsel %vm1506_vm9, %v1498_v36, %v2270_v34  ;;  %v1532_v53 = vsel %vm1506_vm9, %v1499_v48, %v2271_v50  ;;  %v2266_v14 = vunpack.i.h.bf16 %v2264_v12  ;;  %v2265_v25 = vunpack.i.l.bf16 %v2264_v12 }
 0x13a   : > { %v1551_v41 = vpack.c.bf16 %v1532_v53, %v1531_v23  ;;  %v2279_v59 = vpop.permute.xlu1 %2278 }
 0x13b   : > { %v1515_v38 = vsel %vm1506_vm9, %v1482_v47, %v2265_v25  ;;  %v1516_v49 = vsel %vm1506_vm9, %v1483_v21, %v2266_v14  ;;  %v2281_v15 = vunpack.i.h.bf16 %v2279_v59  ;;  %v2280_v2 = vunpack.i.l.bf16 %v2279_v59 }
 0x13c   : > { %v2274_v6 = vpop.permute.xlu0 %2273  ;;  %1801 = vmatprep.subr.msk.bf16.mxu0 %vm1556_vm10, %v1551_v41  ;;  %v1543_v63 = vpack.c.bf16 %v1516_v49, %v1515_v38 }
 0x13d   : > { %v2276_v28 = vunpack.i.h.bf16 %v2274_v6  ;;  %v2275_v7 = vunpack.i.l.bf16 %v2274_v6  ;;  %v1397_v40 = vsel %vm1374_vm5, %v4067_v0, %v2280_v2  ;;  %v1398_v30 = vsel %vm1374_vm5, %v4068_v17, %v2281_v15 }
 0x13e   : > { %v1573_v62 = vsel %vm1556_vm10, %v1543_v63, 0  ;;  %v2289_v10 = vpop.permute.xlu1 %2288 }
 0x13f   : > { %1787 = vmatpush3.bf16.xpose.msra.mxu0 %v1573_v62  ;;  %v2291_v31 = vunpack.i.h.bf16 %v2289_v10  ;;  %v2290_v61 = vunpack.i.l.bf16 %v2289_v10  ;;  %v1382_v22 = vsel %vm1374_vm5, %v4069_v20, %v2276_v28  ;;  %v1381_v33 = vsel %vm1374_vm5, %v4070_v3, %v2275_v7  ;;  %v4071_v7 = vld [vmem:[#allocation22_spill] sm:$0xff] }
 0x140   : > { %v2284_v8 = vpop.permute.xlu0 %2283 }
 0x141   : > { %v2286_v19 = vunpack.i.h.bf16 %v2284_v8  ;;  %v2285_v45 = vunpack.i.l.bf16 %v2284_v8  ;;  %v1430_v43 = vsel %vm1407_vm6, %v1397_v40, %v2290_v61  ;;  %v1431_v24 = vsel %vm1407_vm6, %v1398_v30, %v2291_v31  ;;  %v4072_v61 = vld [vmem:[#allocation11_spill] sm:$0xff] }
 0x142   : > { %v2299_v26 = vpop.permute.xlu1 %2298 }
 0x143   : > { %v2301_v29 = vunpack.i.h.bf16 %v2299_v26  ;;  %v2300_v52 = vunpack.i.l.bf16 %v2299_v26  ;;  %v1414_v1 = vsel %vm1407_vm6, %v1381_v33, %v2285_v45  ;;  %v1415_v16 = vsel %vm1407_vm6, %v1382_v22, %v2286_v19 }
 0x144   : > { %v2294_v32 = vpop.permute.xlu0 %2293 }
 0x145   : > { %v2296_v37 = vunpack.i.h.bf16 %v2294_v32  ;;  %v2295_v58 = vunpack.i.l.bf16 %v2294_v32  ;;  %v1463_v5 = vsel %vm1440_vm7, %v1430_v43, %v2300_v52  ;;  %v1464_v39 = vsel %vm1440_vm7, %v1431_v24, %v2301_v29  ;;  %v4073_v52 = vld [vmem:[#allocation5_spill] sm:$0xff] }
 0x146   : > { %v2309_v51 = vpop.permute.xlu1 %2308 }
 0x147   : > { %v2311_v57 = vunpack.i.h.bf16 %v2309_v51  ;;  %v2310_v46 = vunpack.i.l.bf16 %v2309_v51  ;;  %v1447_v44 = vsel %vm1440_vm7, %v1414_v1, %v2295_v58  ;;  %v1448_v11 = vsel %vm1440_vm7, %v1415_v16, %v2296_v37  ;;  %v4074_v58 = vld [vmem:[#allocation24_spill] sm:$0xff] }
 0x148   : > { %v2304_v18 = vpop.permute.xlu0 %2303 }
 0x149   : > { %v2306_v35 = vunpack.i.h.bf16 %v2304_v18  ;;  %v2305_v4 = vunpack.i.l.bf16 %v2304_v18  ;;  %v1496_v42 = vsel %vm1473_vm8, %v1463_v5, %v2310_v46  ;;  %v1497_v27 = vsel %vm1473_vm8, %v1464_v39, %v2311_v57 }
 0x14a   : > { %v2319_v9 = vpop.permute.xlu1 %2318 }
 0x14b   : > { %v2321_v55 = vunpack.i.h.bf16 %v2319_v9  ;;  %v2320_v60 = vunpack.i.l.bf16 %v2319_v9  ;;  %v1480_v48 = vsel %vm1473_vm8, %v1447_v44, %v2305_v4  ;;  %v1481_v12 = vsel %vm1473_vm8, %v1448_v11, %v2306_v35 }
 0x14c   : > { %v2314_v50 = vpop.permute.xlu0 %2313 }
 0x14d   : > { %v1529_v34 = vsel %vm1506_vm9, %v1496_v42, %v2320_v60  ;;  %v1530_v13 = vsel %vm1506_vm9, %v1497_v27, %v2321_v55  ;;  %v2316_v54 = vunpack.i.h.bf16 %v2314_v50  ;;  %v2315_v36 = vunpack.i.l.bf16 %v2314_v50 }
 0x14e   : > { %v1550_v23 = vpack.c.bf16 %v1530_v13, %v1529_v34  ;;  %v2329_v53 = vpop.permute.xlu1 %2328 }
 0x14f   : > { %v1513_v14 = vsel %vm1506_vm9, %v1480_v48, %v2315_v36  ;;  %v1514_v25 = vsel %vm1506_vm9, %v1481_v12, %v2316_v54  ;;  %v2331_v6 = vunpack.i.h.bf16 %v2329_v53  ;;  %v2330_v63 = vunpack.i.l.bf16 %v2329_v53 }
 0x150   : > { %v2324_v47 = vpop.permute.xlu0 %2323  ;;  %1802 = vmatprep.subr.msk.bf16.mxu0 %vm1556_vm10, %v1550_v23  ;;  %v1542_v21 = vpack.c.bf16 %v1514_v25, %v1513_v14 }
 0x151   : > { %v2326_v10 = vunpack.i.h.bf16 %v2324_v47  ;;  %v2325_v8 = vunpack.i.l.bf16 %v2324_v47  ;;  %v1395_v31 = vsel %vm1374_vm5, %v4071_v7, %v2330_v63  ;;  %v1396_v19 = vsel %vm1374_vm5, %v4072_v61, %v2331_v6 }
 0x152   : > { %v1570_v41 = vsel %vm1556_vm10, %v1542_v21, 0  ;;  %v2339_v59 = vpop.permute.xlu1 %2338 }
 0x153   : > { %1789 = vmatpush3.bf16.xpose.msra.mxu0 %v1570_v41  ;;  %v2341_v26 = vunpack.i.h.bf16 %v2339_v59  ;;  %v2340_v15 = vunpack.i.l.bf16 %v2339_v59  ;;  %v1379_v37 = vsel %vm1374_vm5, %v4073_v52, %v2325_v8  ;;  %v1380_v57 = vsel %vm1374_vm5, %v4074_v58, %v2326_v10  ;;  %v4075_v8 = vld [vmem:[#allocation17_spill] sm:$0xff] }
 0x154   : > { %v2334_v38 = vpop.permute.xlu0 %2333 }
 0x155   : > { %v2336_v2 = vunpack.i.h.bf16 %v2334_v38  ;;  %v2335_v32 = vunpack.i.l.bf16 %v2334_v38  ;;  %v1428_v46 = vsel %vm1407_vm6, %v1395_v31, %v2340_v15  ;;  %v1429_v18 = vsel %vm1407_vm6, %v1396_v19, %v2341_v26  ;;  %v4076_v15 = vld [vmem:[#allocation28_spill] sm:$0xff] }
 0x156   : > { %v2349_v49 = vpop.permute.xlu1 %2348 }
 0x157   : > { %v2351_v45 = vunpack.i.h.bf16 %v2349_v49  ;;  %v2350_v51 = vunpack.i.l.bf16 %v2349_v49  ;;  %v1412_v20 = vsel %vm1407_vm6, %v1379_v37, %v2335_v32  ;;  %v1413_v22 = vsel %vm1407_vm6, %v1380_v57, %v2336_v2 }
 0x158   : > { %v2344_v62 = vpop.permute.xlu0 %2343 }
 0x159   : > { %v2346_v0 = vunpack.i.h.bf16 %v2344_v62  ;;  %v2345_v40 = vunpack.i.l.bf16 %v2344_v62  ;;  %v1461_v24 = vsel %vm1440_vm7, %v1428_v46, %v2350_v51  ;;  %v1462_v1 = vsel %vm1440_vm7, %v1429_v18, %v2351_v45  ;;  %v4077_v51 = vld [vmem:[#allocation20_spill] sm:$0xff] }
 0x15a   : > { %v2359_v28 = vpop.permute.xlu1 %2358 }
 0x15b   : > { %v2361_v17 = vunpack.i.h.bf16 %v2359_v28  ;;  %v2360_v30 = vunpack.i.l.bf16 %v2359_v28  ;;  %v1445_v4 = vsel %vm1440_vm7, %v1412_v20, %v2345_v40  ;;  %v1446_v9 = vsel %vm1440_vm7, %v1413_v22, %v2346_v0  ;;  %v4078_v40 = vld [vmem:[#allocation15_spill] sm:$0xff] }
 0x15c   : > { %v2354_v29 = vpop.permute.xlu0 %2353 }
 0x15d   : > { %v2356_v3 = vunpack.i.h.bf16 %v2354_v29  ;;  %v2355_v33 = vunpack.i.l.bf16 %v2354_v29  ;;  %v1494_v5 = vsel %vm1473_vm8, %v1461_v24, %v2360_v30  ;;  %v1495_v39 = vsel %vm1473_vm8, %v1462_v1, %v2361_v17 }
 0x15e   : > { %v2369_v43 = vpop.permute.xlu1 %2368 }
 0x15f   : > { %v2371_v16 = vunpack.i.h.bf16 %v2369_v43  ;;  %v2370_v35 = vunpack.i.l.bf16 %v2369_v43  ;;  %v1478_v27 = vsel %vm1473_vm8, %v1445_v4, %v2355_v33  ;;  %v1479_v50 = vsel %vm1473_vm8, %v1446_v9, %v2356_v3 }
 0x160   : > { %v2364_v55 = vpop.permute.xlu0 %2363 }
 0x161   : > { %v1527_v60 = vsel %vm1506_vm9, %v1494_v5, %v2370_v35  ;;  %v1528_v44 = vsel %vm1506_vm9, %v1495_v39, %v2371_v16  ;;  %v2366_v11 = vunpack.i.h.bf16 %v2364_v55  ;;  %v2365_v42 = vunpack.i.l.bf16 %v2364_v55 }
 0x162   : > { %v1549_v34 = vpack.c.bf16 %v1528_v44, %v1527_v60  ;;  %v2379_v13 = vpop.permute.xlu1 %2378 }
 0x163   : > { %v1511_v54 = vsel %vm1506_vm9, %v1478_v27, %v2365_v42  ;;  %v1512_v36 = vsel %vm1506_vm9, %v1479_v50, %v2366_v11  ;;  %v2381_v47 = vunpack.i.h.bf16 %v2379_v13  ;;  %v2380_v21 = vunpack.i.l.bf16 %v2379_v13 }
 0x164   : > { %v2374_v48 = vpop.permute.xlu0 %2373  ;;  %1803 = vmatprep.subr.msk.bf16.mxu0 %vm1556_vm10, %v1549_v34  ;;  %v1541_v12 = vpack.c.bf16 %v1512_v36, %v1511_v54 }
 0x165   : > { %v2376_v59 = vunpack.i.h.bf16 %v2374_v48  ;;  %v2375_v38 = vunpack.i.l.bf16 %v2374_v48  ;;  %v1393_v26 = vsel %vm1374_vm5, %v4075_v8, %v2380_v21  ;;  %v1394_v2 = vsel %vm1374_vm5, %v4076_v15, %v2381_v47 }
 0x166   : > { %v1567_v23 = vsel %vm1556_vm10, %v1541_v12, 0  ;;  %v2389_v53 = vpop.permute.xlu1 %2388 }
 0x167   : > { %1791 = vmatpush3.bf16.xpose.msra.mxu0 %v1567_v23  ;;  %v2391_v49 = vunpack.i.h.bf16 %v2389_v53  ;;  %v2390_v6 = vunpack.i.l.bf16 %v2389_v53  ;;  %v1377_v0 = vsel %vm1374_vm5, %v4077_v51, %v2375_v38  ;;  %v1378_v17 = vsel %vm1374_vm5, %v4078_v40, %v2376_v59  ;;  %v4079_v38 = vld [vmem:[#allocation21_spill] sm:$0xff] }
 0x168   : > { %v2384_v14 = vpop.permute.xlu0 %2383 }
 0x169   : > { %v2386_v63 = vunpack.i.h.bf16 %v2384_v14  ;;  %v2385_v62 = vunpack.i.l.bf16 %v2384_v14  ;;  %v1426_v30 = vsel %vm1407_vm6, %v1393_v26, %v2390_v6  ;;  %v1427_v29 = vsel %vm1407_vm6, %v1394_v2, %v2391_v49  ;;  %v4080_v6 = vld [vmem:[#allocation10_spill] sm:$0xff] }
 0x16a   : > { %v2399_v25 = vpop.permute.xlu1 %2398 }
 0x16b   : > { %v2401_v32 = vunpack.i.h.bf16 %v2399_v25  ;;  %v2400_v28 = vunpack.i.l.bf16 %v2399_v25  ;;  %v1410_v52 = vsel %vm1407_vm6, %v1377_v0, %v2385_v62  ;;  %v1411_v37 = vsel %vm1407_vm6, %v1378_v17, %v2386_v63 }
 0x16c   : > { %v2394_v41 = vpop.permute.xlu0 %2393 }
 0x16d   : > { %v2396_v7 = vunpack.i.h.bf16 %v2394_v41  ;;  %v2395_v31 = vunpack.i.l.bf16 %v2394_v41  ;;  %v1459_v18 = vsel %vm1440_vm7, %v1426_v30, %v2400_v28  ;;  %v1460_v20 = vsel %vm1440_vm7, %v1427_v29, %v2401_v32  ;;  %v4081_v28 = vld [vmem:[#allocation19_spill] sm:$0xff] }
 0x16e   : > { %v2409_v10 = vpop.permute.xlu1 %2408 }
 0x16f   : > { %v2411_v61 = vunpack.i.h.bf16 %v2409_v10  ;;  %v2410_v19 = vunpack.i.l.bf16 %v2409_v10  ;;  %v1443_v33 = vsel %vm1440_vm7, %v1410_v52, %v2395_v31  ;;  %v1444_v43 = vsel %vm1440_vm7, %v1411_v37, %v2396_v7  ;;  %v4082_v31 = vld [vmem:[#allocation12_spill] sm:$0xff] }
 0x170   : > { %v2404_v45 = vpop.permute.xlu0 %2403 }
 0x171   : > { %v2406_v58 = vunpack.i.h.bf16 %v2404_v45  ;;  %v2405_v57 = vunpack.i.l.bf16 %v2404_v45  ;;  %v1492_v24 = vsel %vm1473_vm8, %v1459_v18, %v2410_v19  ;;  %v1493_v1 = vsel %vm1473_vm8, %v1460_v20, %v2411_v61 }
 0x172   : > { %v2419_v46 = vpop.permute.xlu1 %2418 }
 0x173   : > { %v2421_v22 = vunpack.i.h.bf16 %v2419_v46  ;;  %v2420_v3 = vunpack.i.l.bf16 %v2419_v46  ;;  %v1476_v39 = vsel %vm1473_vm8, %v1443_v33, %v2405_v57  ;;  %v1477_v55 = vsel %vm1473_vm8, %v1444_v43, %v2406_v58 }
 0x174   : > { %v2414_v16 = vpop.permute.xlu0 %2413 }
 0x175   : > { %v1525_v35 = vsel %vm1506_vm9, %v1492_v24, %v2420_v3  ;;  %v1526_v4 = vsel %vm1506_vm9, %v1493_v1, %v2421_v22  ;;  %v2416_v9 = vunpack.i.h.bf16 %v2414_v16  ;;  %v2415_v5 = vunpack.i.l.bf16 %v2414_v16 }
 0x176   : > { %v1548_v60 = vpack.c.bf16 %v1526_v4, %v1525_v35  ;;  %v2429_v44 = vpop.permute.xlu1 %2428 }
 0x177   : > { %v1509_v11 = vsel %vm1506_vm9, %v1476_v39, %v2415_v5  ;;  %v1510_v42 = vsel %vm1506_vm9, %v1477_v55, %v2416_v9  ;;  %v2431_v48 = vunpack.i.h.bf16 %v2429_v44  ;;  %v2430_v12 = vunpack.i.l.bf16 %v2429_v44 }
 0x178   : > { %v2424_v27 = vpop.permute.xlu0 %2423  ;;  %1804 = vmatprep.subr.msk.bf16.mxu0 %vm1556_vm10, %v1548_v60  ;;  %v1540_v50 = vpack.c.bf16 %v1510_v42, %v1509_v11 }
 0x179   : > { %v2426_v53 = vunpack.i.h.bf16 %v2424_v27  ;;  %v2425_v14 = vunpack.i.l.bf16 %v2424_v27  ;;  %v1391_v49 = vsel %vm1374_vm5, %v4079_v38, %v2430_v12  ;;  %v1392_v63 = vsel %vm1374_vm5, %v4080_v6, %v2431_v48 }
 0x17a   : > { %v1564_v34 = vsel %vm1556_vm10, %v1540_v50, 0  ;;  %v2439_v13 = vpop.permute.xlu1 %2438 }
 0x17b   : > { %1793 = vmatpush3.bf16.xpose.msra.mxu0 %v1564_v34  ;;  %v2441_v25 = vunpack.i.h.bf16 %v2439_v13  ;;  %v2440_v47 = vunpack.i.l.bf16 %v2439_v13  ;;  %v1375_v7 = vsel %vm1374_vm5, %v4081_v28, %v2425_v14  ;;  %v1376_v61 = vsel %vm1374_vm5, %v4082_v31, %v2426_v53 }
 0x17c   : > { %v2434_v54 = vpop.permute.xlu0 %2433 }
 0x17d   : > { %v2436_v21 = vunpack.i.h.bf16 %v2434_v54  ;;  %v2435_v41 = vunpack.i.l.bf16 %v2434_v54  ;;  %v1424_v19 = vsel %vm1407_vm6, %v1391_v49, %v2440_v47  ;;  %v1425_v45 = vsel %vm1407_vm6, %v1392_v63, %v2441_v25 }
 0x17e   : > { %v2449_v36 = vpop.permute.xlu1 %2448 }
 0x17f   : > { %v2451_v62 = vunpack.i.h.bf16 %v2449_v36  ;;  %v2450_v10 = vunpack.i.l.bf16 %v2449_v36  ;;  %v1408_v51 = vsel %vm1407_vm6, %v1375_v7, %v2435_v41  ;;  %v1409_v0 = vsel %vm1407_vm6, %v1376_v61, %v2436_v21 }
 0x180   : > { %v2444_v23 = vpop.permute.xlu0 %2443 }
 0x181   : > { %v2446_v8 = vunpack.i.h.bf16 %v2444_v23  ;;  %v2445_v26 = vunpack.i.l.bf16 %v2444_v23  ;;  %v1457_v29 = vsel %vm1440_vm7, %v1424_v19, %v2450_v10  ;;  %v1458_v52 = vsel %vm1440_vm7, %v1425_v45, %v2451_v62 }
 0x182   : > { %v2459_v59 = vpop.permute.xlu1 %2458 }
 0x183   : > { %v2461_v15 = vunpack.i.h.bf16 %v2459_v59  ;;  %v2460_v2 = vunpack.i.l.bf16 %v2459_v59  ;;  %v1441_v57 = vsel %vm1440_vm7, %v1408_v51, %v2445_v26  ;;  %v1442_v46 = vsel %vm1440_vm7, %v1409_v0, %v2446_v8 }
 0x184   : > { %v2454_v32 = vpop.permute.xlu0 %2453 }
 0x185   : > { %v2456_v40 = vunpack.i.h.bf16 %v2454_v32  ;;  %v2455_v17 = vunpack.i.l.bf16 %v2454_v32  ;;  %v1490_v18 = vsel %vm1473_vm8, %v1457_v29, %v2460_v2  ;;  %v1491_v20 = vsel %vm1473_vm8, %v1458_v52, %v2461_v15 }
 0x186   : > { %v2469_v30 = vpop.permute.xlu1 %2468 }
 0x187   : > { %v2471_v37 = vunpack.i.h.bf16 %v2469_v30  ;;  %v2470_v58 = vunpack.i.l.bf16 %v2469_v30  ;;  %v1474_v1 = vsel %vm1473_vm8, %v1441_v57, %v2455_v17  ;;  %v1475_v16 = vsel %vm1473_vm8, %v1442_v46, %v2456_v40 }
 0x188   : > { %v2464_v22 = vpop.permute.xlu0 %2463 }
 0x189   : > { %v1523_v3 = vsel %vm1506_vm9, %v1490_v18, %v2470_v58  ;;  %v1524_v33 = vsel %vm1506_vm9, %v1491_v20, %v2471_v37  ;;  %v2466_v43 = vunpack.i.h.bf16 %v2464_v22  ;;  %v2465_v24 = vunpack.i.l.bf16 %v2464_v22 }
 0x18a   : > { %v1547_v35 = vpack.c.bf16 %v1524_v33, %v1523_v3 }
 0x18b   : > { %v1507_v4 = vsel %vm1506_vm9, %v1474_v1, %v2465_v24  ;;  %v1508_v9 = vsel %vm1506_vm9, %v1475_v16, %v2466_v43 }
 0x18c   : > { %1805 = vmatprep.subr.msk.bf16.mxu0 %vm1556_vm10, %v1547_v35  ;;  %v1539_v5 = vpack.c.bf16 %v1508_v9, %v1507_v4 }
 0x18e   : > { %v1561_v39 = vsel %vm1556_vm10, %v1539_v5, 0 }
 0x18f   : > { %1795 = vmatpush3.bf16.xpose.msra.mxu0 %v1561_v39 }
 0x196   : > { %1797 = vmatmul.mubr.msk.bf16.vlgmr.msra.gmra.mxu0 %vm1556_vm10, %v3683_v56 }
 0x256   : > { %v1642_v55 = vpop.f32.mrf.mxu0 }
 0x257   : > { %1652 = vst [vmem:[%s1651_s7] sm:$0xff] %v1642_v55 }
 0x258   : > { %v1644_v60 = vpop.f32.mrf.mxu0  ;;  %1657 = sbr.rel (%p1774_p4) target bundleno = 787 (0x313), region = 40 }
 0x259   : > { %1653 = vst [vmem:[%s1651_s7 + $0x8] sm:$0xff] %v1644_v60 }
 0x25a   : > { %v1646_v44 = vpop.f32.mrf.mxu0 }
 0x25c   : > { %v1647_v11 = vpop.f32.mrf.mxu0 }
 0x25d   : > { %v2536_v48 = vmov 0   ;;  %v1692_v56 = vld [vmem:[%s3938_s2] sm:$0xff] }
 0x25e   : > { %2488 = vset.pattern.permute.xlu1 %v2536_v48  ;;  %2489 = vset.pattern.permute.xlu0 %v2536_v48  ;;  %v1702_v25 = vld [vmem:[%s3939_s3] sm:$0xff] }
 0x25f   : > { %1695 = vperm.xlu1 %2488, %v1692_v56  }
 0x260   : > { %v1658_v42 = vld [vmem:[#allocation2] sm:$0xff]  ;;  %v1659_v27 = vld [vmem:[#allocation2 + $0x8] sm:$0xff]  ;;  %v1660_v50 = vld [vmem:[#allocation2 + $0x10] sm:$0xff] }
 0x261   : > { %v1662_v34 = vadd.f32 %v1659_v27, %v1658_v42  ;;  %v1667_v13 = vmul.f32 %v1658_v42, %v1658_v42  ;;  %v1668_v54 = vmul.f32 %v1659_v27, %v1659_v27  ;;  %v1669_v36 = vmul.f32 %v1660_v50, %v1660_v50  ;;  %v1661_v12 = vld [vmem:[#allocation2 + $0x18] sm:$0xff] }
 0x262   : > { %v1670_v53 = vmul.f32 %v1661_v12, %v1661_v12 }
 0x263   : > { %v1663_v23 = vadd.f32 %v1662_v34, %v1660_v50  ;;  %v1671_v14 = vadd.f32 %v1668_v54, %v1667_v13  ;;  %1705 = vperm.xlu1 %2488, %v1702_v25  }
 0x265   : > { %v1664_v47 = vadd.f32 %v1663_v23, %v1661_v12  ;;  %v1672_v21 = vadd.f32 %v1671_v14, %v1669_v36 }
 0x267   : > { %1665 = vadd.xlane.f32.xlu0 %v1664_v47  ;;  %v1673_v41 = vadd.f32 %v1672_v21, %v1670_v53 }
 0x26b   : > { %1674 = vadd.xlane.f32.xlu0 %v1673_v41 }
 0x2da   : > { %v1696_v26 = vpop.permute.xlu1 %1695 }
 0x2de   : > { %v1706_v30 = vpop.permute.xlu1 %1705 }
 0x2f0   : > { %v1666_v59 = vpop.xlane.xlu0 %1665 }
 0x2f1   : > { %v1677_v38 = vmul.f32 0.001953125, %v1666_v59 }
 0x2f3   : > { %v1679_v6 = vmul.f32 %v1677_v38, %v1677_v38  ;;  %v1684_v15 = vsub.f32 %v1658_v42, %v1677_v38  ;;  %v1685_v2 = vsub.f32 %v1659_v27, %v1677_v38  ;;  %v1686_v32 = vsub.f32 %v1660_v50, %v1677_v38 }
 0x2f4   : > { %v1675_v49 = vpop.xlane.xlu0 %1674  ;;  %v1687_v28 = vsub.f32 %v1661_v12, %v1677_v38 }
 0x2f5   : > { %v1678_v63 = vmul.f32 0.001953125, %v1675_v49 }
 0x2f7   : > { %v1680_v62 = vsub.f32 %v1678_v63, %v1679_v6 }
 0x2f9   : > { %v1681_v10 = vmax.f32 %v1680_v62, 0.0 }
 0x2fb   : > { %v1682_v8 = vadd.f32 1e-05, %v1681_v10 }
 0x2fd   : > { %2490 = vrsqrt.f32 %v1682_v8 }
 0x30a   : > { %v2491_v7 = vpop.eup %2490 }
 0x30b   : > { %v1688_v31 = vmul.f32 %v2491_v7, %v1684_v15  ;;  %v1689_v61 = vmul.f32 %v2491_v7, %v1685_v2  ;;  %v1690_v19 = vmul.f32 %v2491_v7, %v1686_v32  ;;  %v1691_v45 = vmul.f32 %v2491_v7, %v1687_v28 }
 0x30d   : > { %v1698_v51 = vmul.f32 %v1696_v26, %v1688_v31  ;;  %v1699_v0 = vmul.f32 %v1696_v26, %v1689_v61  ;;  %v1700_v40 = vmul.f32 %v1696_v26, %v1690_v19  ;;  %v1701_v17 = vmul.f32 %v1696_v26, %v1691_v45 }
 0x30f   : > { %v1708_v29 = vadd.f32 %v1706_v30, %v1698_v51  ;;  %v1709_v52 = vadd.f32 %v1706_v30, %v1699_v0  ;;  %v1710_v37 = vadd.f32 %v1706_v30, %v1700_v40  ;;  %v1711_v58 = vadd.f32 %v1706_v30, %v1701_v17 }
 0x311   : > { %1712 = vst [vmem:[#allocation2] sm:$0xff] %v1708_v29  ;;  %1713 = vst [vmem:[#allocation2 + $0x8] sm:$0xff] %v1709_v52 }
 0x312   : > { %1714 = vst [vmem:[#allocation2 + $0x10] sm:$0xff] %v1710_v37  ;;  %1715 = vst [vmem:[#allocation2 + $0x18] sm:$0xff] %v1711_v58 }
 0x313 PF: > { %p1811_p5 = scmp.eq.s32.totalorder %s2570_s16, 1  ;;  %s2537_s12 = smov [#allocation2]  }
 0x314   : > { %s1722_s13 = sshll.u32 %s2537_s12, 4  ;;  %s1723_s13 = int_to_ptr.vmem [resolvable:$true] %s1722_s13 }
 0x315   : > { %s2492_s14 = scalar_lea.vmem %s1723_s13, 512  ;;  %p2499_p9 = scmp.lt.s32.totalorder %s1723_s13, %s1723_s13 }
 0x316   : > { %p2493_p6 = scmp.ne.s32.totalorder %s1723_s13, %s2492_s14  ;;  %p2500_p10 = scmp.lt.s32.totalorder %s2492_s14, %s2492_s14 }
 0x318   : > { %p2494_p7 = pnand %p2493_p6, %p1811_p5  ;;  %p2501_p11 = por %p2500_p10, %p2499_p9 }
 0x31a   : > { %p2495_p8 = pneg %p2494_p7 }
 0x31c   : > { %p2502_p12 = pnand %p2501_p11, %p2495_p8 }
 0x31e   : > { %2505 = shalt.err (!%p2502_p12)
}
 0x31f   : > { %s2538_s17 = smov 256  }
 0x320   : > { %1808 = dma.vmem_to_hbm [thread:$0]  (%p1811_p5), %s1723_s13, 512, %s3940_s4, [#allocation3], %s2538_s17, %s2538_s17, %s2531_s25  }
 0x321   : > { %2521 = dma.done.wait (%p1811_p5), [#allocation3], 512  }
 0x322   : > { %2523 = vsyncadd (%p1811_p5), [#allocation3], 4294966784 }
 0x323 PF: > { %s15_s15 = sadd.s32 1, %s2526_s15  }
 0x324   : > { %p12_p13 = scmp.ge.s32.totalorder %s15_s15, 4  }
 0x326   :  { %14 = sbr.rel (!%p12_p13) target bundleno = 1 (0x1), region = 68 }
 0x32b   :  { %1738 = vsyncpa [#allocation3], 1 }
 0x32c   :  { %1740 = vsyncpa [#allocation3 + $0x1], 1 }

</bundles_post_ra>
